<compile_context>
chip_gen: v7x
topology: tpu7x:2x2x1
jax: 0.10.0
libtpu: 0.0.40
codegen_flags: <defaults>
</compile_context>

<pallas_src>
import functools
import numpy as np

import jax
import jax.numpy as jnp
from jax.experimental import pallas as pl
from jax.experimental.pallas import tpu as pltpu


def _layer_norm(z, g, b, eps=1e-5):
    mu = jnp.mean(z, axis=-1, keepdims=True)
    var = jnp.mean(jnp.square(z - mu), axis=-1, keepdims=True)
    return (z - mu) * jax.lax.rsqrt(var + eps) * g + b


def fft_block_kernel(
    x_ref, pad_k_ref, pad_q_ref,
    wq_ref, bq_ref, wk_ref, bk_ref, wv_ref, bv_ref,
    fcw_ref, fcb_ref, ln1_g_ref, ln1_b_ref,
    w1_ref, b1_ref, w2_ref, b2_ref, ln2_g_ref, ln2_b_ref,
    out_ref, attn_out_ref=None,
    *, n_head, d_k, d_v, compute_dtype,
):
    f32 = jnp.float32
    x = x_ref[0]                       # (L, D) f32
    L, D = x.shape

    # Hoisted masks (computed once per grid step, reused across heads / where's).
    pad_row = pad_k_ref[0]             # (1, L) float, 1.0 == padded key position
    pad_col = pad_q_ref[0]             # (L, 1) float, 1.0 == padded query position
    key_bias = jnp.where(pad_row > 0.5, f32(-1e9), f32(0.0))    # additive score bias
    pos_is_pad = pad_col > 0.5                                   # (L, 1) bool

    # ---- fused QKV projections (1/sqrt(d_k) already folded into wq/bq host-side) ----
    xc = x.astype(compute_dtype)
    q = jnp.dot(xc, wq_ref[...], preferred_element_type=f32) + bq_ref[...]
    k = jnp.dot(xc, wk_ref[...], preferred_element_type=f32) + bk_ref[...]
    v = jnp.dot(xc, wv_ref[...], preferred_element_type=f32) + bv_ref[...]

    # ---- per-head attention, accumulating straight into the output projection ----
    acc = jnp.zeros((L, D), f32)
    for h in range(n_head):
        qh = q[:, h * d_k:(h + 1) * d_k].astype(compute_dtype)   # (L, d_k)
        kh = k[:, h * d_k:(h + 1) * d_k].astype(compute_dtype)   # (L, d_k)
        vh = v[:, h * d_v:(h + 1) * d_v].astype(compute_dtype)   # (L, d_v)

        # q @ k^T without materializing a transpose: contract last dims of both.
        s = jax.lax.dot_general(
            qh, kh, dimension_numbers=(((1,), (1,)), ((), ())),
            preferred_element_type=f32)                           # (L, L)
        s = s + key_bias

        m = jnp.max(s, axis=-1, keepdims=True)
        p = jnp.exp(s - m)
        denom = jnp.sum(p, axis=-1, keepdims=True)
        attn = p * pl.reciprocal(denom, approx=True)              # softmax over keys

        if attn_out_ref is not None:
            attn_out_ref[h, 0] = attn.astype(attn_out_ref.dtype)  # head-major write

        ctx = jnp.dot(attn.astype(compute_dtype), vh,
                      preferred_element_type=f32)                 # (L, d_v)
        fcw_h = fcw_ref[h * d_v:(h + 1) * d_v, :]                 # (d_v, D) sublane slice
        acc = acc + jnp.dot(ctx.astype(compute_dtype), fcw_h,
                            preferred_element_type=f32)           # accumulate projection

    # residual + LayerNorm (eps = 1e-5, affine)
    y = acc + fcb_ref[...] + x
    y = _layer_norm(y, ln1_g_ref[...], ln1_b_ref[...])
    # masked_fill(mask.unsqueeze(-1), 0)
    y = jnp.where(pos_is_pad, f32(0.0), y)

    # ---- position-wise FFN (Conv1d k=1 -> matmul) ----
    h1 = jnp.maximum(
        jnp.dot(y.astype(compute_dtype), w1_ref[...], preferred_element_type=f32)
        + b1_ref[...], 0.0)
    f = jnp.dot(h1.astype(compute_dtype), w2_ref[...], preferred_element_type=f32) \
        + b2_ref[...]

    z = _layer_norm(f + y, ln2_g_ref[...], ln2_b_ref[...])
    z = jnp.where(pos_is_pad, f32(0.0), z)

    out_ref[0] = z.astype(out_ref.dtype)


def _full_spec(arr):
    nd = arr.ndim
    return pl.BlockSpec(arr.shape, lambda b, _nd=nd: (0,) * _nd)


def fft_block(x, pad, params, *, n_head, d_k, d_v,
              return_attn=True, compute_dtype=jnp.float32):
    """x: (B, L, D) float32; pad: (B, L) float (1.0 == padded position).

    params: [wq, bq, wk, bk, wv, bv, fcw, fcb, ln1_g, ln1_b, w1, b1, w2, b2, ln2_g, ln2_b]
    with Linear weights in (in, out) layout and biases shaped (1, out).
    """
    B, L, D = x.shape
    (wq, bq, wk, bk, wv, bv, fcw, fcb, g1, be1, w1, b1, w2, b2, g2, be2) = params

    # Fold 1/sqrt(d_k) into the query projection on the host (zero in-kernel work).
    temperature = float(np.power(d_k, 0.5))
    wq = wq / temperature
    bq = bq / temperature

    def wcast(w):  # matmul weights in compute dtype (bf16 halves DMA + feeds MXU fast path)
        return w.astype(compute_dtype)

    prepped = [wcast(wq), bq, wcast(wk), bk, wcast(wv), bv, wcast(fcw), fcb,
               g1, be1, wcast(w1), b1, wcast(w2), b2, g2, be2]

    pad = pad.astype(jnp.float32)
    pad_k = pad[:, None, :]     # (B, 1, L) lane-major key-padding row
    pad_q = pad[:, :, None]     # (B, L, 1) query/position padding column

    kernel = functools.partial(fft_block_kernel, n_head=n_head, d_k=d_k, d_v=d_v,
                               compute_dtype=compute_dtype)

    in_specs = [
        pl.BlockSpec((1, L, D), lambda b: (b, 0, 0)),
        pl.BlockSpec((1, 1, L), lambda b: (b, 0, 0)),
        pl.BlockSpec((1, L, 1), lambda b: (b, 0, 0)),
    ] + [_full_spec(p) for p in prepped]

    out_shape = [jax.ShapeDtypeStruct((B, L, D), x.dtype)]
    out_specs = [pl.BlockSpec((1, L, D), lambda b: (b, 0, 0))]
    if return_attn:
        # Head-major layout: matches PyTorch's (n_head*B, L, L) after a free reshape.
        out_shape.append(jax.ShapeDtypeStruct((n_head, B, L, L), jnp.float32))
        out_specs.append(pl.BlockSpec((n_head, 1, L, L), lambda b: (0, b, 0, 0)))

    results = pl.pallas_call(
        kernel,
        out_shape=tuple(out_shape),
        grid=(B,),
        in_specs=in_specs,
        out_specs=tuple(out_specs),
        compiler_params=pltpu.CompilerParams(
            dimension_semantics=("parallel",),
            vmem_limit_bytes=64 * 1024 * 1024,
        ),
    )(x, pad_k, pad_q, *prepped)

    if return_attn:
        enc_out, attn = results
        return enc_out, attn.reshape(n_head * B, L, L)
    return results[0]


# --------------------- pure-JAX reference for validation ---------------------
def ref_fft_block(x, pad, params, *, n_head, d_k, d_v):
    (wq, bq, wk, bk, wv, bv, fcw, fcb, g1, be1, w1, b1, w2, b2, g2, be2) = params
    B, L, D = x.shape
    q = x @ wq + bq[0]
    k = x @ wk + bk[0]
    v = x @ wv + bv[0]
    qh = q.reshape(B, L, n_head, d_k).transpose(0, 2, 1, 3)
    kh = k.reshape(B, L, n_head, d_k).transpose(0, 2, 1, 3)
    vh = v.reshape(B, L, n_head, d_v).transpose(0, 2, 1, 3)
    s = jnp.einsum('bhqd,bhkd->bhqk', qh, kh) / np.power(d_k, 0.5)
    s = s + jnp.where(pad[:, None, None, :] > 0.5, -1e9, 0.0)
    s_max = jnp.max(s, axis=-1, keepdims=True)
    p = jnp.exp(s - s_max)
    a = p / jnp.sum(p, axis=-1, keepdims=True)
    ctx = jnp.einsum('bhqk,bhkd->bhqd', a, vh)
    ctx = ctx.transpose(0, 2, 1, 3).reshape(B, L, n_head * d_v)
    y = ctx @ fcw + fcb[0] + x

    def ln(z, g, b):
        mu = z.mean(-1, keepdims=True)
        var = ((z - mu) ** 2).mean(-1, keepdims=True)
        return (z - mu) / jnp.sqrt(var + 1e-5) * g[0] + b[0]

    y = ln(y, g1, be1)
    y = jnp.where(pad[..., None] > 0.5, 0.0, y)
    h = jnp.maximum(y @ w1 + b1[0], 0.0)
    f = h @ w2 + b2[0] + y
    z = ln(f, g2, be2)
    z = jnp.where(pad[..., None] > 0.5, 0.0, z)
    attn = a.transpose(1, 0, 2, 3).reshape(n_head * B, L, L)
    return z, attn


if __name__ == "__main__":
    B, L = 2, 16
    d_model, d_inner, n_head, d_k, d_v = 32, 64, 2, 16, 16

    key = jax.random.PRNGKey(0)
    ks = jax.random.split(key, 16)

    def init(k, shape, scale=0.05):
        return jax.random.normal(k, shape, jnp.float32) * scale

    x = jax.random.normal(ks[0], (B, L, d_model), jnp.float32)

    params = [
        init(ks[1], (d_model, n_head * d_k)),  init(ks[2], (1, n_head * d_k)),   # w_qs
        init(ks[3], (d_model, n_head * d_k)),  init(ks[4], (1, n_head * d_k)),   # w_ks
        init(ks[5], (d_model, n_head * d_v)),  init(ks[6], (1, n_head * d_v)),   # w_vs
        init(ks[7], (n_head * d_v, d_model)),  init(ks[8], (1, d_model)),        # fc
        jnp.ones((1, d_model), jnp.float32),   jnp.zeros((1, d_model), jnp.float32),  # ln1
        init(ks[9], (d_model, d_inner)),       init(ks[10], (1, d_inner)),       # conv w_1 (k=1)
        init(ks[11], (d_inner, d_model)),      init(ks[12], (1, d_model)),       # conv w_2 (k=1)
        jnp.ones((1, d_model), jnp.float32),   jnp.zeros((1, d_model), jnp.float32),  # ln2
    ]

    # padding mask: last 3 positions of batch element 1 are padding.
    pad = jnp.zeros((B, L), jnp.float32).at[1, L - 3:].set(1.0)

    # --- fp32 path with attention output ---
    enc_out, attn = fft_block(x, pad, params, n_head=n_head, d_k=d_k, d_v=d_v,
                              return_attn=True)
    enc_out = jax.block_until_ready(enc_out)
    attn = jax.block_until_ready(attn)

    ref_out, ref_attn = ref_fft_block(x, pad, params, n_head=n_head, d_k=d_k, d_v=d_v)
    # approx EUP reciprocal/rsqrt -> slightly looser tolerance than exact fp32
    np.testing.assert_allclose(np.asarray(enc_out), np.asarray(ref_out),
                               rtol=2e-3, atol=2e-3)
    np.testing.assert_allclose(np.asarray(attn), np.asarray(ref_attn),
                               rtol=2e-3, atol=2e-3)

    # --- attention-free fast path (no attn DMA/VMEM at all) ---
    enc_out_na = fft_block(x, pad, params, n_head=n_head, d_k=d_k, d_v=d_v,
                           return_attn=False)
    enc_out_na = jax.block_until_ready(enc_out_na)
    np.testing.assert_allclose(np.asarray(enc_out_na), np.asarray(ref_out),
                               rtol=2e-3, atol=2e-3)

    # --- bf16 MXU path (v6e/v7x throughput; f32 accumulation) ---
    enc_bf16, attn_bf16 = fft_block(x, pad, params, n_head=n_head, d_k=d_k, d_v=d_v,
                                    return_attn=True, compute_dtype=jnp.bfloat16)
    enc_bf16 = jax.block_until_ready(enc_bf16)
    attn_bf16 = jax.block_until_ready(attn_bf16)
    np.testing.assert_allclose(np.asarray(enc_bf16), np.asarray(ref_out),
                               rtol=1e-1, atol=1e-1)

    print("KERNEL_OK")
</pallas_src>

<mosaic_0001>
module attributes {stable_mosaic.version = 11 : i64} {
  func.func @fft_block_kernel(%arg0: i32, %arg1: memref<1x16x32xf32, #tpu.memory_space<vmem>>, %arg2: memref<1x1x16xf32, #tpu.memory_space<vmem>>, %arg3: memref<1x16x1xf32, #tpu.memory_space<vmem>>, %arg4: memref<32x32xf32, #tpu.memory_space<vmem>>, %arg5: memref<1x32xf32, #tpu.memory_space<vmem>>, %arg6: memref<32x32xf32, #tpu.memory_space<vmem>>, %arg7: memref<1x32xf32, #tpu.memory_space<vmem>>, %arg8: memref<32x32xf32, #tpu.memory_space<vmem>>, %arg9: memref<1x32xf32, #tpu.memory_space<vmem>>, %arg10: memref<32x32xf32, #tpu.memory_space<vmem>>, %arg11: memref<1x32xf32, #tpu.memory_space<vmem>>, %arg12: memref<1x32xf32, #tpu.memory_space<vmem>>, %arg13: memref<1x32xf32, #tpu.memory_space<vmem>>, %arg14: memref<32x64xf32, #tpu.memory_space<vmem>>, %arg15: memref<1x64xf32, #tpu.memory_space<vmem>>, %arg16: memref<64x32xf32, #tpu.memory_space<vmem>>, %arg17: memref<1x32xf32, #tpu.memory_space<vmem>>, %arg18: memref<1x32xf32, #tpu.memory_space<vmem>>, %arg19: memref<1x32xf32, #tpu.memory_space<vmem>>, %arg20: memref<1x16x32xf32, #tpu.memory_space<vmem>>, %arg21: memref<2x1x16x16xf32, #tpu.memory_space<vmem>>) attributes {dimension_semantics = [#tpu.dimension_semantics<parallel>], iteration_bounds = array<i64: 2>, scalar_prefetch = 0 : i64, scratch_operands = 0 : i64, tpu.core_type = #tpu.core_type<tc>, window_params = [{transform_indices = @transform_0, window_bounds = array<i64: 1, 16, 32>}, {transform_indices = @transform_1, window_bounds = array<i64: 1, 1, 16>}, {transform_indices = @transform_2, window_bounds = array<i64: 1, 16, 1>}, {pipeline_mode = #tpu.pipeline_mode<synchronous>, transform_indices = @transform_3, window_bounds = array<i64: 32, 32>}, {pipeline_mode = #tpu.pipeline_mode<synchronous>, transform_indices = @transform_4, window_bounds = array<i64: 1, 32>}, {pipeline_mode = #tpu.pipeline_mode<synchronous>, transform_indices = @transform_5, window_bounds = array<i64: 32, 32>}, {pipeline_mode = #tpu.pipeline_mode<synchronous>, transform_indices = @transform_6, window_bounds = array<i64: 1, 32>}, {pipeline_mode = #tpu.pipeline_mode<synchronous>, transform_indices = @transform_7, window_bounds = array<i64: 32, 32>}, {pipeline_mode = #tpu.pipeline_mode<synchronous>, transform_indices = @transform_8, window_bounds = array<i64: 1, 32>}, {pipeline_mode = #tpu.pipeline_mode<synchronous>, transform_indices = @transform_9, window_bounds = array<i64: 32, 32>}, {pipeline_mode = #tpu.pipeline_mode<synchronous>, transform_indices = @transform_10, window_bounds = array<i64: 1, 32>}, {pipeline_mode = #tpu.pipeline_mode<synchronous>, transform_indices = @transform_11, window_bounds = array<i64: 1, 32>}, {pipeline_mode = #tpu.pipeline_mode<synchronous>, transform_indices = @transform_12, window_bounds = array<i64: 1, 32>}, {pipeline_mode = #tpu.pipeline_mode<synchronous>, transform_indices = @transform_13, window_bounds = array<i64: 32, 64>}, {pipeline_mode = #tpu.pipeline_mode<synchronous>, transform_indices = @transform_14, window_bounds = array<i64: 1, 64>}, {pipeline_mode = #tpu.pipeline_mode<synchronous>, transform_indices = @transform_15, window_bounds = array<i64: 64, 32>}, {pipeline_mode = #tpu.pipeline_mode<synchronous>, transform_indices = @transform_16, window_bounds = array<i64: 1, 32>}, {pipeline_mode = #tpu.pipeline_mode<synchronous>, transform_indices = @transform_17, window_bounds = array<i64: 1, 32>}, {pipeline_mode = #tpu.pipeline_mode<synchronous>, transform_indices = @transform_18, window_bounds = array<i64: 1, 32>}, {transform_indices = @transform_19, window_bounds = array<i64: 1, 16, 32>}, {transform_indices = @transform_20, window_bounds = array<i64: 2, 1, 16, 16>}]} {
    %c0 = arith.constant 0 : index
    %c0_0 = arith.constant 0 : index
    %c0_1 = arith.constant 0 : index
    %0 = vector.load %arg1[%c0, %c0_0, %c0_1] : memref<1x16x32xf32, #tpu.memory_space<vmem>>, vector<1x16x32xf32>
    %1 = vector.shape_cast %0 : vector<1x16x32xf32> to vector<16x32xf32>
    %c0_2 = arith.constant 0 : index
    %c0_3 = arith.constant 0 : index
    %c0_4 = arith.constant 0 : index
    %2 = vector.load %arg2[%c0_2, %c0_3, %c0_4] : memref<1x1x16xf32, #tpu.memory_space<vmem>>, vector<1x1x16xf32>
    %3 = vector.shape_cast %2 : vector<1x1x16xf32> to vector<1x16xf32>
    %c0_5 = arith.constant 0 : index
    %c0_6 = arith.constant 0 : index
    %c0_7 = arith.constant 0 : index
    %4 = vector.load %arg3[%c0_5, %c0_6, %c0_7] : memref<1x16x1xf32, #tpu.memory_space<vmem>>, vector<1x16x1xf32>
    %5 = vector.shape_cast %4 : vector<1x16x1xf32> to vector<16x1xf32>
    %cst = arith.constant 5.000000e-01 : f32
    %6 = vector.broadcast %cst : f32 to vector<1x16xf32>
    %7 = arith.cmpf ogt, %3, %6 : vector<1x16xf32>
    %cst_8 = arith.constant -1.000000e+09 : f32
    %cst_9 = arith.constant 0.000000e+00 : f32
    %8 = vector.broadcast %cst_8 : f32 to vector<1x16xf32>
    %9 = vector.broadcast %cst_9 : f32 to vector<1x16xf32>
    %10 = arith.select %7, %8, %9 : vector<1x16xi1>, vector<1x16xf32>
    %cst_10 = arith.constant 5.000000e-01 : f32
    %11 = vector.broadcast %cst_10 : f32 to vector<16x1xf32>
    %12 = arith.cmpf ogt, %5, %11 : vector<16x1xf32>
    %c0_11 = arith.constant 0 : index
    %c0_12 = arith.constant 0 : index
    %13 = vector.load %arg4[%c0_11, %c0_12] : memref<32x32xf32, #tpu.memory_space<vmem>>, vector<32x32xf32>
    %cst_13 = arith.constant dense<0.000000e+00> : vector<16x32xf32>
    %14 = tpu.matmul %1, %13, %cst_13 {dimension_numbers = #tpu.dot_dimension_numbers<[1], [0], [0], [1], [0, 0, 1, 1], [], []>} : vector<16x32xf32>, vector<32x32xf32>, vector<16x32xf32> -> vector<16x32xf32>
    %c0_14 = arith.constant 0 : index
    %c0_15 = arith.constant 0 : index
    %15 = vector.load %arg5[%c0_14, %c0_15] : memref<1x32xf32, #tpu.memory_space<vmem>>, vector<1x32xf32>
    %16 = vector.broadcast %15 : vector<1x32xf32> to vector<16x32xf32>
    %17 = arith.addf %14, %16 : vector<16x32xf32>
    %c0_16 = arith.constant 0 : index
    %c0_17 = arith.constant 0 : index
    %18 = vector.load %arg6[%c0_16, %c0_17] : memref<32x32xf32, #tpu.memory_space<vmem>>, vector<32x32xf32>
    %cst_18 = arith.constant dense<0.000000e+00> : vector<16x32xf32>
    %19 = tpu.matmul %1, %18, %cst_18 {dimension_numbers = #tpu.dot_dimension_numbers<[1], [0], [0], [1], [0, 0, 1, 1], [], []>} : vector<16x32xf32>, vector<32x32xf32>, vector<16x32xf32> -> vector<16x32xf32>
    %c0_19 = arith.constant 0 : index
    %c0_20 = arith.constant 0 : index
    %20 = vector.load %arg7[%c0_19, %c0_20] : memref<1x32xf32, #tpu.memory_space<vmem>>, vector<1x32xf32>
    %21 = vector.broadcast %20 : vector<1x32xf32> to vector<16x32xf32>
    %22 = arith.addf %19, %21 : vector<16x32xf32>
    %c0_21 = arith.constant 0 : index
    %c0_22 = arith.constant 0 : index
    %23 = vector.load %arg8[%c0_21, %c0_22] : memref<32x32xf32, #tpu.memory_space<vmem>>, vector<32x32xf32>
    %cst_23 = arith.constant dense<0.000000e+00> : vector<16x32xf32>
    %24 = tpu.matmul %1, %23, %cst_23 {dimension_numbers = #tpu.dot_dimension_numbers<[1], [0], [0], [1], [0, 0, 1, 1], [], []>} : vector<16x32xf32>, vector<32x32xf32>, vector<16x32xf32> -> vector<16x32xf32>
    %c0_24 = arith.constant 0 : index
    %c0_25 = arith.constant 0 : index
    %25 = vector.load %arg9[%c0_24, %c0_25] : memref<1x32xf32, #tpu.memory_space<vmem>>, vector<1x32xf32>
    %26 = vector.broadcast %25 : vector<1x32xf32> to vector<16x32xf32>
    %27 = arith.addf %24, %26 : vector<16x32xf32>
    %cst_26 = arith.constant 0.000000e+00 : f32
    %28 = vector.broadcast %cst_26 : f32 to vector<16x32xf32>
    %29 = vector.extract_strided_slice %17 {offsets = [0, 0], sizes = [16, 16], strides = [1, 1]} : vector<16x32xf32> to vector<16x16xf32>
    %30 = vector.extract_strided_slice %22 {offsets = [0, 0], sizes = [16, 16], strides = [1, 1]} : vector<16x32xf32> to vector<16x16xf32>
    %31 = vector.extract_strided_slice %27 {offsets = [0, 0], sizes = [16, 16], strides = [1, 1]} : vector<16x32xf32> to vector<16x16xf32>
    %cst_27 = arith.constant dense<0.000000e+00> : vector<16x16xf32>
    %32 = tpu.matmul %29, %30, %cst_27 {dimension_numbers = #tpu.dot_dimension_numbers<[1], [1], [0], [0], [0, 0, 1, 0], [], []>} : vector<16x16xf32>, vector<16x16xf32>, vector<16x16xf32> -> vector<16x16xf32>
    %33 = vector.broadcast %10 : vector<1x16xf32> to vector<16x16xf32>
    %34 = arith.addf %32, %33 : vector<16x16xf32>
    %cst_28 = arith.constant dense<0xFF800000> : vector<16xf32>
    %35 = vector.multi_reduction <maximumf>, %34, %cst_28 [1] : vector<16x16xf32> to vector<16xf32>
    %36 = vector.shape_cast %35 : vector<16xf32> to vector<16x1xf32>
    %37 = vector.broadcast %36 : vector<16x1xf32> to vector<16x16xf32>
    %38 = arith.subf %34, %37 : vector<16x16xf32>
    %39 = math.exp %38 : vector<16x16xf32>
    %cst_29 = arith.constant dense<0.000000e+00> : vector<16xf32>
    %40 = vector.multi_reduction <add>, %39, %cst_29 [1] : vector<16x16xf32> to vector<16xf32>
    %41 = vector.shape_cast %40 : vector<16xf32> to vector<16x1xf32>
    %42 = tpu.reciprocal %41 {approx = true} : vector<16x1xf32> -> vector<16x1xf32>
    %43 = vector.broadcast %42 : vector<16x1xf32> to vector<16x16xf32>
    %44 = arith.mulf %39, %43 : vector<16x16xf32>
    %c0_30 = arith.constant 0 : index
    %c0_31 = arith.constant 0 : index
    %c0_32 = arith.constant 0 : index
    %c0_33 = arith.constant 0 : index
    %45 = vector.load %arg21[%c0_30, %c0_31, %c0_32, %c0_33] : memref<2x1x16x16xf32, #tpu.memory_space<vmem>>, vector<1x1x16x16xf32>
    %46 = vector.shape_cast %45 : vector<1x1x16x16xf32> to vector<16x16xf32>
    %47 = vector.shape_cast %44 : vector<16x16xf32> to vector<1x1x16x16xf32>
    tpu.vector_store %arg21[%c0_30, %c0_31, %c0_32, %c0_33], %47 {strides = array<i32>} : memref<2x1x16x16xf32, #tpu.memory_space<vmem>>, vector<1x1x16x16xf32>,
    %cst_34 = arith.constant dense<0.000000e+00> : vector<16x16xf32>
    %48 = tpu.matmul %44, %31, %cst_34 {dimension_numbers = #tpu.dot_dimension_numbers<[1], [0], [0], [1], [0, 0, 1, 1], [], []>} : vector<16x16xf32>, vector<16x16xf32>, vector<16x16xf32> -> vector<16x16xf32>
    %c0_35 = arith.constant 0 : index
    %c0_36 = arith.constant 0 : index
    %49 = vector.load %arg10[%c0_35, %c0_36] : memref<32x32xf32, #tpu.memory_space<vmem>>, vector<16x32xf32>
    %cst_37 = arith.constant dense<0.000000e+00> : vector<16x32xf32>
    %50 = tpu.matmul %48, %49, %cst_37 {dimension_numbers = #tpu.dot_dimension_numbers<[1], [0], [0], [1], [0, 0, 1, 1], [], []>} : vector<16x16xf32>, vector<16x32xf32>, vector<16x32xf32> -> vector<16x32xf32>
    %51 = arith.addf %28, %50 : vector<16x32xf32>
    %52 = vector.extract_strided_slice %17 {offsets = [0, 16], sizes = [16, 16], strides = [1, 1]} : vector<16x32xf32> to vector<16x16xf32>
    %53 = vector.extract_strided_slice %22 {offsets = [0, 16], sizes = [16, 16], strides = [1, 1]} : vector<16x32xf32> to vector<16x16xf32>
    %54 = vector.extract_strided_slice %27 {offsets = [0, 16], sizes = [16, 16], strides = [1, 1]} : vector<16x32xf32> to vector<16x16xf32>
    %cst_38 = arith.constant dense<0.000000e+00> : vector<16x16xf32>
    %55 = tpu.matmul %52, %53, %cst_38 {dimension_numbers = #tpu.dot_dimension_numbers<[1], [1], [0], [0], [0, 0, 1, 0], [], []>} : vector<16x16xf32>, vector<16x16xf32>, vector<16x16xf32> -> vector<16x16xf32>
    %56 = vector.broadcast %10 : vector<1x16xf32> to vector<16x16xf32>
    %57 = arith.addf %55, %56 : vector<16x16xf32>
    %cst_39 = arith.constant dense<0xFF800000> : vector<16xf32>
    %58 = vector.multi_reduction <maximumf>, %57, %cst_39 [1] : vector<16x16xf32> to vector<16xf32>
    %59 = vector.shape_cast %58 : vector<16xf32> to vector<16x1xf32>
    %60 = vector.broadcast %59 : vector<16x1xf32> to vector<16x16xf32>
    %61 = arith.subf %57, %60 : vector<16x16xf32>
    %62 = math.exp %61 : vector<16x16xf32>
    %cst_40 = arith.constant dense<0.000000e+00> : vector<16xf32>
    %63 = vector.multi_reduction <add>, %62, %cst_40 [1] : vector<16x16xf32> to vector<16xf32>
    %64 = vector.shape_cast %63 : vector<16xf32> to vector<16x1xf32>
    %65 = tpu.reciprocal %64 {approx = true} : vector<16x1xf32> -> vector<16x1xf32>
    %66 = vector.broadcast %65 : vector<16x1xf32> to vector<16x16xf32>
    %67 = arith.mulf %62, %66 : vector<16x16xf32>
    %c1 = arith.constant 1 : index
    %c0_41 = arith.constant 0 : index
    %c0_42 = arith.constant 0 : index
    %c0_43 = arith.constant 0 : index
    %68 = vector.load %arg21[%c1, %c0_41, %c0_42, %c0_43] : memref<2x1x16x16xf32, #tpu.memory_space<vmem>>, vector<1x1x16x16xf32>
    %69 = vector.shape_cast %68 : vector<1x1x16x16xf32> to vector<16x16xf32>
    %70 = vector.shape_cast %67 : vector<16x16xf32> to vector<1x1x16x16xf32>
    tpu.vector_store %arg21[%c1, %c0_41, %c0_42, %c0_43], %70 {strides = array<i32>} : memref<2x1x16x16xf32, #tpu.memory_space<vmem>>, vector<1x1x16x16xf32>,
    %cst_44 = arith.constant dense<0.000000e+00> : vector<16x16xf32>
    %71 = tpu.matmul %67, %54, %cst_44 {dimension_numbers = #tpu.dot_dimension_numbers<[1], [0], [0], [1], [0, 0, 1, 1], [], []>} : vector<16x16xf32>, vector<16x16xf32>, vector<16x16xf32> -> vector<16x16xf32>
    %c16 = arith.constant 16 : index
    %c0_45 = arith.constant 0 : index
    %72 = vector.load %arg10[%c16, %c0_45] : memref<32x32xf32, #tpu.memory_space<vmem>>, vector<16x32xf32>
    %cst_46 = arith.constant dense<0.000000e+00> : vector<16x32xf32>
    %73 = tpu.matmul %71, %72, %cst_46 {dimension_numbers = #tpu.dot_dimension_numbers<[1], [0], [0], [1], [0, 0, 1, 1], [], []>} : vector<16x16xf32>, vector<16x32xf32>, vector<16x32xf32> -> vector<16x32xf32>
    %74 = arith.addf %51, %73 : vector<16x32xf32>
    %c0_47 = arith.constant 0 : index
    %c0_48 = arith.constant 0 : index
    %75 = vector.load %arg11[%c0_47, %c0_48] : memref<1x32xf32, #tpu.memory_space<vmem>>, vector<1x32xf32>
    %76 = vector.broadcast %75 : vector<1x32xf32> to vector<16x32xf32>
    %77 = arith.addf %74, %76 : vector<16x32xf32>
    %78 = arith.addf %77, %1 : vector<16x32xf32>
    %c0_49 = arith.constant 0 : index
    %c0_50 = arith.constant 0 : index
    %79 = vector.load %arg12[%c0_49, %c0_50] : memref<1x32xf32, #tpu.memory_space<vmem>>, vector<1x32xf32>
    %c0_51 = arith.constant 0 : index
    %c0_52 = arith.constant 0 : index
    %80 = vector.load %arg13[%c0_51, %c0_52] : memref<1x32xf32, #tpu.memory_space<vmem>>, vector<1x32xf32>
    %cst_53 = arith.constant dense<0.000000e+00> : vector<16xf32>
    %81 = vector.multi_reduction <add>, %78, %cst_53 [1] : vector<16x32xf32> to vector<16xf32>
    %82 = vector.shape_cast %81 : vector<16xf32> to vector<16x1xf32>
    %cst_54 = arith.constant 3.200000e+01 : f32
    %83 = vector.broadcast %cst_54 : f32 to vector<16x1xf32>
    %84 = arith.divf %82, %83 : vector<16x1xf32>
    %85 = vector.broadcast %84 : vector<16x1xf32> to vector<16x32xf32>
    %86 = arith.subf %78, %85 : vector<16x32xf32>
    %87 = arith.mulf %86, %86 : vector<16x32xf32>
    %cst_55 = arith.constant dense<0.000000e+00> : vector<16xf32>
    %88 = vector.multi_reduction <add>, %87, %cst_55 [1] : vector<16x32xf32> to vector<16xf32>
    %89 = vector.shape_cast %88 : vector<16xf32> to vector<16x1xf32>
    %cst_56 = arith.constant 3.200000e+01 : f32
    %90 = vector.broadcast %cst_56 : f32 to vector<16x1xf32>
    %91 = arith.divf %89, %90 : vector<16x1xf32>
    %92 = vector.broadcast %84 : vector<16x1xf32> to vector<16x32xf32>
    %93 = arith.subf %78, %92 : vector<16x32xf32>
    %cst_57 = arith.constant 9.99999974E-6 : f32
    %94 = vector.broadcast %cst_57 : f32 to vector<16x1xf32>
    %95 = arith.addf %91, %94 : vector<16x1xf32>
    %96 = math.rsqrt %95 : vector<16x1xf32>
    %97 = vector.broadcast %96 : vector<16x1xf32> to vector<16x32xf32>
    %98 = arith.mulf %93, %97 : vector<16x32xf32>
    %99 = vector.broadcast %79 : vector<1x32xf32> to vector<16x32xf32>
    %100 = arith.mulf %98, %99 : vector<16x32xf32>
    %101 = vector.broadcast %80 : vector<1x32xf32> to vector<16x32xf32>
    %102 = arith.addf %100, %101 : vector<16x32xf32>
    %cst_58 = arith.constant 0.000000e+00 : f32
    %103 = vector.shape_cast %12 : vector<16x1xi1> to vector<16x1xi1>
    %104 = vector.broadcast %103 : vector<16x1xi1> to vector<16x32xi1>
    %105 = vector.broadcast %cst_58 : f32 to vector<16x32xf32>
    %106 = arith.select %104, %105, %102 : vector<16x32xi1>, vector<16x32xf32>
    %c0_59 = arith.constant 0 : index
    %c0_60 = arith.constant 0 : index
    %107 = vector.load %arg14[%c0_59, %c0_60] : memref<32x64xf32, #tpu.memory_space<vmem>>, vector<32x64xf32>
    %cst_61 = arith.constant dense<0.000000e+00> : vector<16x64xf32>
    %108 = tpu.matmul %106, %107, %cst_61 {dimension_numbers = #tpu.dot_dimension_numbers<[1], [0], [0], [1], [0, 0, 1, 1], [], []>} : vector<16x32xf32>, vector<32x64xf32>, vector<16x64xf32> -> vector<16x64xf32>
    %c0_62 = arith.constant 0 : index
    %c0_63 = arith.constant 0 : index
    %109 = vector.load %arg15[%c0_62, %c0_63] : memref<1x64xf32, #tpu.memory_space<vmem>>, vector<1x64xf32>
    %110 = vector.broadcast %109 : vector<1x64xf32> to vector<16x64xf32>
    %111 = arith.addf %108, %110 : vector<16x64xf32>
    %cst_64 = arith.constant 0.000000e+00 : f32
    %112 = vector.broadcast %cst_64 : f32 to vector<16x64xf32>
    %113 = arith.maximumf %111, %112 : vector<16x64xf32>
    %c0_65 = arith.constant 0 : index
    %c0_66 = arith.constant 0 : index
    %114 = vector.load %arg16[%c0_65, %c0_66] : memref<64x32xf32, #tpu.memory_space<vmem>>, vector<64x32xf32>
    %cst_67 = arith.constant dense<0.000000e+00> : vector<16x32xf32>
    %115 = tpu.matmul %113, %114, %cst_67 {dimension_numbers = #tpu.dot_dimension_numbers<[1], [0], [0], [1], [0, 0, 1, 1], [], []>} : vector<16x64xf32>, vector<64x32xf32>, vector<16x32xf32> -> vector<16x32xf32>
    %c0_68 = arith.constant 0 : index
    %c0_69 = arith.constant 0 : index
    %116 = vector.load %arg17[%c0_68, %c0_69] : memref<1x32xf32, #tpu.memory_space<vmem>>, vector<1x32xf32>
    %117 = vector.broadcast %116 : vector<1x32xf32> to vector<16x32xf32>
    %118 = arith.addf %115, %117 : vector<16x32xf32>
    %119 = arith.addf %118, %106 : vector<16x32xf32>
    %c0_70 = arith.constant 0 : index
    %c0_71 = arith.constant 0 : index
    %120 = vector.load %arg18[%c0_70, %c0_71] : memref<1x32xf32, #tpu.memory_space<vmem>>, vector<1x32xf32>
    %c0_72 = arith.constant 0 : index
    %c0_73 = arith.constant 0 : index
    %121 = vector.load %arg19[%c0_72, %c0_73] : memref<1x32xf32, #tpu.memory_space<vmem>>, vector<1x32xf32>
    %cst_74 = arith.constant dense<0.000000e+00> : vector<16xf32>
    %122 = vector.multi_reduction <add>, %119, %cst_74 [1] : vector<16x32xf32> to vector<16xf32>
    %123 = vector.shape_cast %122 : vector<16xf32> to vector<16x1xf32>
    %cst_75 = arith.constant 3.200000e+01 : f32
    %124 = vector.broadcast %cst_75 : f32 to vector<16x1xf32>
    %125 = arith.divf %123, %124 : vector<16x1xf32>
    %126 = vector.broadcast %125 : vector<16x1xf32> to vector<16x32xf32>
    %127 = arith.subf %119, %126 : vector<16x32xf32>
    %128 = arith.mulf %127, %127 : vector<16x32xf32>
    %cst_76 = arith.constant dense<0.000000e+00> : vector<16xf32>
    %129 = vector.multi_reduction <add>, %128, %cst_76 [1] : vector<16x32xf32> to vector<16xf32>
    %130 = vector.shape_cast %129 : vector<16xf32> to vector<16x1xf32>
    %cst_77 = arith.constant 3.200000e+01 : f32
    %131 = vector.broadcast %cst_77 : f32 to vector<16x1xf32>
    %132 = arith.divf %130, %131 : vector<16x1xf32>
    %133 = vector.broadcast %125 : vector<16x1xf32> to vector<16x32xf32>
    %134 = arith.subf %119, %133 : vector<16x32xf32>
    %cst_78 = arith.constant 9.99999974E-6 : f32
    %135 = vector.broadcast %cst_78 : f32 to vector<16x1xf32>
    %136 = arith.addf %132, %135 : vector<16x1xf32>
    %137 = math.rsqrt %136 : vector<16x1xf32>
    %138 = vector.broadcast %137 : vector<16x1xf32> to vector<16x32xf32>
    %139 = arith.mulf %134, %138 : vector<16x32xf32>
    %140 = vector.broadcast %120 : vector<1x32xf32> to vector<16x32xf32>
    %141 = arith.mulf %139, %140 : vector<16x32xf32>
    %142 = vector.broadcast %121 : vector<1x32xf32> to vector<16x32xf32>
    %143 = arith.addf %141, %142 : vector<16x32xf32>
    %cst_79 = arith.constant 0.000000e+00 : f32
    %144 = vector.shape_cast %12 : vector<16x1xi1> to vector<16x1xi1>
    %145 = vector.broadcast %144 : vector<16x1xi1> to vector<16x32xi1>
    %146 = vector.broadcast %cst_79 : f32 to vector<16x32xf32>
    %147 = arith.select %145, %146, %143 : vector<16x32xi1>, vector<16x32xf32>
    %c0_80 = arith.constant 0 : index
    %c0_81 = arith.constant 0 : index
    %c0_82 = arith.constant 0 : index
    %148 = vector.load %arg20[%c0_80, %c0_81, %c0_82] : memref<1x16x32xf32, #tpu.memory_space<vmem>>, vector<1x16x32xf32>
    %149 = vector.shape_cast %148 : vector<1x16x32xf32> to vector<16x32xf32>
    %150 = vector.shape_cast %147 : vector<16x32xf32> to vector<1x16x32xf32>
    tpu.vector_store %arg20[%c0_80, %c0_81, %c0_82], %150 {strides = array<i32>} : memref<1x16x32xf32, #tpu.memory_space<vmem>>, vector<1x16x32xf32>,
    return
  }
  func.func @transform_0(%arg0: i32) -> (i32, i32, i32) {
    %c0_i32 = arith.constant 0 : i32
    %c0_i32_0 = arith.constant 0 : i32
    %c0_i32_1 = arith.constant 0 : i32
    return %arg0, %c0_i32, %c0_i32_0 : i32, i32, i32
  }
  func.func @transform_1(%arg0: i32) -> (i32, i32, i32) {
    %c0_i32 = arith.constant 0 : i32
    %c0_i32_0 = arith.constant 0 : i32
    %c0_i32_1 = arith.constant 0 : i32
    return %arg0, %c0_i32, %c0_i32_0 : i32, i32, i32
  }
  func.func @transform_2(%arg0: i32) -> (i32, i32, i32) {
    %c0_i32 = arith.constant 0 : i32
    %c0_i32_0 = arith.constant 0 : i32
    %c0_i32_1 = arith.constant 0 : i32
    return %arg0, %c0_i32, %c0_i32_0 : i32, i32, i32
  }
  func.func @transform_3(%arg0: i32) -> (i32, i32) {
    %c0_i32 = arith.constant 0 : i32
    %c0_i32_0 = arith.constant 0 : i32
    %c0_i32_1 = arith.constant 0 : i32
    return %c0_i32, %c0_i32_0 : i32, i32
  }
  func.func @transform_4(%arg0: i32) -> (i32, i32) {
    %c0_i32 = arith.constant 0 : i32
    %c0_i32_0 = arith.constant 0 : i32
    %c0_i32_1 = arith.constant 0 : i32
    return %c0_i32, %c0_i32_0 : i32, i32
  }
  func.func @transform_5(%arg0: i32) -> (i32, i32) {
    %c0_i32 = arith.constant 0 : i32
    %c0_i32_0 = arith.constant 0 : i32
    %c0_i32_1 = arith.constant 0 : i32
    return %c0_i32, %c0_i32_0 : i32, i32
  }
  func.func @transform_6(%arg0: i32) -> (i32, i32) {
    %c0_i32 = arith.constant 0 : i32
    %c0_i32_0 = arith.constant 0 : i32
    %c0_i32_1 = arith.constant 0 : i32
    return %c0_i32, %c0_i32_0 : i32, i32
  }
  func.func @transform_7(%arg0: i32) -> (i32, i32) {
    %c0_i32 = arith.constant 0 : i32
    %c0_i32_0 = arith.constant 0 : i32
    %c0_i32_1 = arith.constant 0 : i32
    return %c0_i32, %c0_i32_0 : i32, i32
  }
  func.func @transform_8(%arg0: i32) -> (i32, i32) {
    %c0_i32 = arith.constant 0 : i32
    %c0_i32_0 = arith.constant 0 : i32
    %c0_i32_1 = arith.constant 0 : i32
    return %c0_i32, %c0_i32_0 : i32, i32
  }
  func.func @transform_9(%arg0: i32) -> (i32, i32) {
    %c0_i32 = arith.constant 0 : i32
    %c0_i32_0 = arith.constant 0 : i32
    %c0_i32_1 = arith.constant 0 : i32
    return %c0_i32, %c0_i32_0 : i32, i32
  }
  func.func @transform_10(%arg0: i32) -> (i32, i32) {
    %c0_i32 = arith.constant 0 : i32
    %c0_i32_0 = arith.constant 0 : i32
    %c0_i32_1 = arith.constant 0 : i32
    return %c0_i32, %c0_i32_0 : i32, i32
  }
  func.func @transform_11(%arg0: i32) -> (i32, i32) {
    %c0_i32 = arith.constant 0 : i32
    %c0_i32_0 = arith.constant 0 : i32
    %c0_i32_1 = arith.constant 0 : i32
    return %c0_i32, %c0_i32_0 : i32, i32
  }
  func.func @transform_12(%arg0: i32) -> (i32, i32) {
    %c0_i32 = arith.constant 0 : i32
    %c0_i32_0 = arith.constant 0 : i32
    %c0_i32_1 = arith.constant 0 : i32
    return %c0_i32, %c0_i32_0 : i32, i32
  }
  func.func @transform_13(%arg0: i32) -> (i32, i32) {
    %c0_i32 = arith.constant 0 : i32
    %c0_i32_0 = arith.constant 0 : i32
    %c0_i32_1 = arith.constant 0 : i32
    return %c0_i32, %c0_i32_0 : i32, i32
  }
  func.func @transform_14(%arg0: i32) -> (i32, i32) {
    %c0_i32 = arith.constant 0 : i32
    %c0_i32_0 = arith.constant 0 : i32
    %c0_i32_1 = arith.constant 0 : i32
    return %c0_i32, %c0_i32_0 : i32, i32
  }
  func.func @transform_15(%arg0: i32) -> (i32, i32) {
    %c0_i32 = arith.constant 0 : i32
    %c0_i32_0 = arith.constant 0 : i32
    %c0_i32_1 = arith.constant 0 : i32
    return %c0_i32, %c0_i32_0 : i32, i32
  }
  func.func @transform_16(%arg0: i32) -> (i32, i32) {
    %c0_i32 = arith.constant 0 : i32
    %c0_i32_0 = arith.constant 0 : i32
    %c0_i32_1 = arith.constant 0 : i32
    return %c0_i32, %c0_i32_0 : i32, i32
  }
  func.func @transform_17(%arg0: i32) -> (i32, i32) {
    %c0_i32 = arith.constant 0 : i32
    %c0_i32_0 = arith.constant 0 : i32
    %c0_i32_1 = arith.constant 0 : i32
    return %c0_i32, %c0_i32_0 : i32, i32
  }
  func.func @transform_18(%arg0: i32) -> (i32, i32) {
    %c0_i32 = arith.constant 0 : i32
    %c0_i32_0 = arith.constant 0 : i32
    %c0_i32_1 = arith.constant 0 : i32
    return %c0_i32, %c0_i32_0 : i32, i32
  }
  func.func @transform_19(%arg0: i32) -> (i32, i32, i32) {
    %c0_i32 = arith.constant 0 : i32
    %c0_i32_0 = arith.constant 0 : i32
    %c0_i32_1 = arith.constant 0 : i32
    return %arg0, %c0_i32, %c0_i32_0 : i32, i32, i32
  }
  func.func @transform_20(%arg0: i32) -> (i32, i32, i32, i32) {
    %c0_i32 = arith.constant 0 : i32
    %c0_i32_0 = arith.constant 0 : i32
    %c0_i32_1 = arith.constant 0 : i32
    %c0_i32_2 = arith.constant 0 : i32
    return %c0_i32, %arg0, %c0_i32_0, %c0_i32_1 : i32, i32, i32, i32
  }
}

</mosaic_0001>

<bundles_post_ra>
// kernel: tpu_custom_call.1
= control target key start
LH: loop header
LB: loop body
LE: loop exit
PB: predicated region body
PF: predicated region fallthrough
CT: control target
= control target key end

     0   :  { %s4633_s0 = inlined_call_operand.hbm [shape: f32[2,16,32], index: 0, kind: input, shape index: {}]   ;;  %s4634_s1 = inlined_call_operand.hbm [shape: f32[2,1,16], index: 1, kind: input, shape index: {}]   ;;  %s4635_s2 = inlined_call_operand.hbm [shape: f32[2,16,1], index: 2, kind: input, shape index: {}]   ;;  %s4636_s3 = inlined_call_operand.hbm [shape: f32[32,32], index: 3, kind: input, shape index: {}]   ;;  %s4637_s4 = inlined_call_operand.hbm [shape: f32[1,32], index: 4, kind: input, shape index: {}]   ;;  %s4638_s5 = inlined_call_operand.hbm [shape: f32[32,32], index: 5, kind: input, shape index: {}]   ;;  %s4639_s6 = inlined_call_operand.hbm [shape: f32[1,32], index: 6, kind: input, shape index: {}]   ;;  %s4640_s7 = inlined_call_operand.hbm [shape: f32[32,32], index: 7, kind: input, shape index: {}]   ;;  %s4641_s8 = inlined_call_operand.hbm [shape: f32[1,32], index: 8, kind: input, shape index: {}]   ;;  %s4642_s9 = inlined_call_operand.hbm [shape: f32[32,32], index: 9, kind: input, shape index: {}]   ;;  %s4643_s10 = inlined_call_operand.hbm [shape: f32[1,32], index: 10, kind: input, shape index: {}]   ;;  %s4644_s11 = inlined_call_operand.hbm [shape: f32[1,32], index: 11, kind: input, shape index: {}]   ;;  %s4645_s12 = inlined_call_operand.hbm [shape: f32[1,32], index: 12, kind: input, shape index: {}]   ;;  %s4646_s13 = inlined_call_operand.hbm [shape: f32[32,64], index: 13, kind: input, shape index: {}]   ;;  %s4647_s14 = inlined_call_operand.hbm [shape: f32[1,64], index: 14, kind: input, shape index: {}]   ;;  %s4648_s15 = inlined_call_operand.hbm [shape: f32[64,32], index: 15, kind: input, shape index: {}]   ;;  %s4649_s16 = inlined_call_operand.hbm [shape: f32[1,32], index: 16, kind: input, shape index: {}]   ;;  %s4650_s17 = inlined_call_operand.hbm [shape: f32[1,32], index: 17, kind: input, shape index: {}]   ;;  %s4651_s18 = inlined_call_operand.hbm [shape: f32[1,32], index: 18, kind: input, shape index: {}]   ;;  %s4652_s19 = inlined_call_operand.hbm [shape: f32[2,16,32], index: 19, kind: output, shape index: {0}]   ;;  %s4653_s20 = inlined_call_operand.hbm [shape: f32[2,2,16,16], index: 20, kind: output, shape index: {1}]  }
   0x1   :  { %4689 = sst [smem:[#allocation51_spill]] %s4633_s0 }
   0x2   :  { %4690 = sst [smem:[#allocation52_spill]] %s4634_s1 }
   0x3   :  { %4691 = sst [smem:[#allocation53_spill]] %s4635_s2 }
   0x4   :  { %4692 = sst [smem:[#allocation54_spill]] %s4636_s3 }
   0x5   :  { %4693 = sst [smem:[#allocation55_spill]] %s4637_s4 }
   0x6   :  { %4694 = sst [smem:[#allocation56_spill]] %s4638_s5 }
   0x7   :  { %4695 = sst [smem:[#allocation57_spill]] %s4639_s6 }
   0x8   :  { %4696 = sst [smem:[#allocation58_spill]] %s4640_s7 }
   0x9   :  { %4697 = sst [smem:[#allocation59_spill]] %s4641_s8 }
   0xa   :  { %4698 = sst [smem:[#allocation60_spill]] %s4642_s9 }
   0xb   :  { %4699 = sst [smem:[#allocation61_spill]] %s4643_s10 }
   0xc   :  { %4700 = sst [smem:[#allocation62_spill]] %s4644_s11 }
   0xd   :  { %4701 = sst [smem:[#allocation63_spill]] %s4645_s12 }
   0xe   :  { %4702 = sst [smem:[#allocation64_spill]] %s4646_s13 }
   0xf   :  { %4703 = sst [smem:[#allocation65_spill]] %s4647_s14 }
  0x10   :  { %4704 = sst [smem:[#allocation66_spill]] %s4648_s15 }
  0x11   :  { %4705 = sst [smem:[#allocation67_spill]] %s4649_s16 }
  0x12   :  { %4706 = sst [smem:[#allocation68_spill]] %s4650_s17 }
  0x13   :  { %4707 = sst [smem:[#allocation69_spill]] %s4651_s18 }
  0x14   :  { %4708 = sst [smem:[#allocation70_spill]] %s4652_s19 }
  0x15   :  { %4709 = sst [smem:[#allocation71_spill]] %s4653_s20 }
  0x16   :  { %26 = vsyncpa [#allocation3], 0 }
  0x17   :  { %28 = vsyncpa [#allocation3 + $0x1], 0 }
  0x18   :  { %29 = vsyncpa [#allocation6], 0 }
  0x19   :  { %31 = vsyncpa [#allocation6 + $0x1], 0 }
  0x1a   :  { %32 = vsyncpa [#allocation9], 0 }
  0x1b   :  { %33 = vsyncpa [#allocation12], 0 }
  0x1c   :  { %34 = vsyncpa [#allocation15], 0 }
  0x1d   :  { %35 = vsyncpa [#allocation18], 0 }
  0x1e   :  { %36 = vsyncpa [#allocation21], 0 }
  0x1f   :  { %37 = vsyncpa [#allocation24], 0 }
  0x20   :  { %38 = vsyncpa [#allocation27], 0 }
  0x21   :  { %39 = vsyncpa [#allocation30], 0 }
  0x22   :  { %40 = vsyncpa [#allocation4], 0 }
  0x23   :  { %42 = vsyncpa [#allocation4 + $0x1], 0 }
  0x24   :  { %43 = vsyncpa [#allocation34], 0 }
  0x25   :  { %45 = vsyncpa [#allocation34 + $0x1], 0  ;;  %s3857_s1 = smov 0   ;;  %s3859_s22 = smov 0  }
  0x26   :  { %s3861_s23 = smov 0   ;;  %s3863_s24 = smov 0  }
  0x27 LB: > { %s3718_s2 = smov [#allocation8]   ;;  %s3878_s3 = sadd.s32 4294967295, %s3716_s24   ;;  %s3716_s24 = sphi %s3863_s24, %s4778_s24   ;;  %s3712_s23 = sphi %s3861_s23, %s4777_s23   ;;  %s3708_s22 = sphi %s3859_s22, %s4776_s22   ;;  %s3704_s1 = sphi %s3857_s1, %s4775_s1  }
  0x28   : > { %s534_s25 = sshll.u32 %s3718_s2, 4  ;;  %p2457_p0 = scmp.ge.s32.totalorder %s3716_s24, 1  ;;  %s3883_s25 = int_to_ptr.vmem [resolvable:$true] %s534_s25 }
  0x29   : > { %p4667_p1 = scmp.eq.s32.totalorder %s3878_s3, 0  ;;  %p522_p2 = scmp.lt.s32.totalorder %s3716_s24, 3 }
  0x2a   : > { %s3719_s27 = smov [#allocation11]   ;;  %s3720_s29 = smov [#allocation14]  }
  0x2b   : > { %p3885_p3 = pnand %p2457_p0, %p522_p2  ;;  %s558_s28 = sshll.u32 %s3719_s27, 4  ;;  %s3898_s28 = int_to_ptr.vmem [resolvable:$true] %s558_s28 }
  0x2c   : > { %s582_s30 = sshll.u32 %s3720_s29, 4  ;;  %s4713_s2 = sld [smem:[#allocation54_spill]]  ;;  %s3900_s30 = int_to_ptr.vmem [resolvable:$true] %s582_s30 }
  0x2d   : > { %s4710_s26 = scalar_select %p3885_p3, 1, 0 }
  0x2e   : > { %p2874_p5 = pneg %p3885_p3 }
  0x2f   : > { %4711 = sst [smem:[#allocation49_spill]] %s4710_s26 }
  0x30   : > { %p3894_p6 = pnand %p2874_p5, %p4667_p1 }
  0x32   : > { %s4712_s4 = scalar_select %p3894_p6, 1, 0 }
  0x33   : > { %s3072_s20 = scalar_lea.hbm %s4713_s2, 512  ;;  %p3910_p8 = pneg %p3894_p6 }
  0x34   : > { %p3073_p7 = scmp.ne.s32.totalorder %s4713_s2, %s3072_s20  ;;  %p3079_p11 = scmp.lt.u32.totalorder %s3072_s20, %s4713_s2 }
  0x35   : > { %s4714_s27 = scalar_select %p3910_p8, 1, 0 }
  0x36   : > { %p3075_p9 = pnand %p3910_p8, %p3073_p7 }
  0x38   : > { %p3076_p10 = pneg %p3075_p9 }
  0x3a   : > { %p3081_p12 = pnand %p3079_p11, %p3076_p10 }
  0x3c   : > { %3084 = shalt.err (!%p3081_p12)
}
  0x3d   : > { %s3085_s19 = scalar_lea.vmem %s3883_s25, 512  ;;  %p3093_p5 = scmp.lt.s32.totalorder %s3883_s25, %s3883_s25 }
  0x3e   : > { %p3086_p13 = scmp.ne.s32.totalorder %s3883_s25, %s3085_s19  ;;  %p3094_p4 = scmp.lt.s32.totalorder %s3085_s19, %s3085_s19 }
  0x40   : > { %p3088_p0 = pnand %p3086_p13, %p3910_p8  ;;  %p3095_p7 = por %p3094_p4, %p3093_p5 }
  0x42   : > { %p3089_p2 = pneg %p3088_p0 }
  0x44   : > { %p3096_p9 = pnand %p3095_p7, %p3089_p2 }
  0x46   : > { %3099 = shalt.err (!%p3096_p9)
}
  0x47   : > { %s4669_s26 = smov 128   ;;  %s4671_s18 = smov 8  }
  0x48   : > { %2877 = dma.hbm_to_vmem [thread:$0]  (!%p3894_p6), %s4713_s2, 512, %s3883_s25, [#allocation9], %s4669_s26, %s4669_s26, %s4671_s18  }
  0x49   : > { %s4715_s5 = sld [smem:[#allocation56_spill]] }
  0x4f   : > { %s3100_s19 = scalar_lea.hbm %s4715_s5, 512 }
  0x50   : > { %p3101_p4 = scmp.ne.s32.totalorder %s4715_s5, %s3100_s19  ;;  %p3107_p12 = scmp.lt.u32.totalorder %s3100_s19, %s4715_s5 }
  0x52   : > { %p3103_p10 = pnand %p3101_p4, %p3910_p8 }
  0x54   : > { %p3104_p11 = pneg %p3103_p10 }
  0x56   : > { %p3109_p13 = pnand %p3107_p12, %p3104_p11 }
  0x58   : > { %3112 = shalt.err (!%p3109_p13)
}
  0x59   : > { %s3113_s25 = scalar_lea.vmem %s3898_s28, 512  ;;  %p3121_p7 = scmp.lt.s32.totalorder %s3898_s28, %s3898_s28 }
  0x5a   : > { %p3114_p0 = scmp.ne.s32.totalorder %s3898_s28, %s3113_s25  ;;  %p3122_p9 = scmp.lt.s32.totalorder %s3113_s25, %s3113_s25 }
  0x5c   : > { %p3116_p2 = pnand %p3114_p0, %p3910_p8  ;;  %p3123_p4 = por %p3122_p9, %p3121_p7 }
  0x5e   : > { %p3117_p5 = pneg %p3116_p2 }
  0x60   : > { %p3124_p10 = pnand %p3123_p4, %p3117_p5 }
  0x62   : > { %3127 = shalt.err (!%p3124_p10)
}
  0x63   : > { %2883 = dma.hbm_to_vmem [thread:$0]  (!%p3894_p6), %s4715_s5, 512, %s3898_s28, [#allocation12], %s4669_s26, %s4669_s26, %s4671_s18  }
  0x64   : > { %s4716_s7 = sld [smem:[#allocation58_spill]] }
  0x6a   : > { %s3128_s20 = scalar_lea.hbm %s4716_s7, 512 }
  0x6b   : > { %p3129_p11 = scmp.ne.s32.totalorder %s4716_s7, %s3128_s20  ;;  %p3135_p0 = scmp.lt.u32.totalorder %s3128_s20, %s4716_s7 }
  0x6d   : > { %p3131_p12 = pnand %p3129_p11, %p3910_p8 }
  0x6f   : > { %p3132_p13 = pneg %p3131_p12 }
  0x71   : > { %p3137_p2 = pnand %p3135_p0, %p3132_p13 }
  0x73   : > { %3140 = shalt.err (!%p3137_p2)
}
  0x74   : > { %s3141_s28 = scalar_lea.vmem %s3900_s30, 512  ;;  %p3149_p4 = scmp.lt.s32.totalorder %s3900_s30, %s3900_s30 }
  0x75   : > { %p3142_p5 = scmp.ne.s32.totalorder %s3900_s30, %s3141_s28  ;;  %p3150_p10 = scmp.lt.s32.totalorder %s3141_s28, %s3141_s28 }
  0x77   : > { %p3144_p7 = pnand %p3142_p5, %p3910_p8  ;;  %p3151_p11 = por %p3150_p10, %p3149_p4 }
  0x79   : > { %p3145_p9 = pneg %p3144_p7 }
  0x7b   : > { %p3152_p12 = pnand %p3151_p11, %p3145_p9 }
  0x7d   : > { %3155 = shalt.err (!%p3152_p12)
}
  0x7e   : > { %2889 = dma.hbm_to_vmem [thread:$0]  (!%p3894_p6), %s4716_s7, 512, %s3900_s30, [#allocation15], %s4669_s26, %s4669_s26, %s4671_s18  }
  0x7f   : > { %s3723_s12 = smov [#allocation17]   ;;  %s3724_s16 = smov [#allocation20]  }
  0x80   : > { %s606_s14 = sshll.u32 %s3723_s12, 4  ;;  %s631_s20 = sshll.u32 %s3724_s16, 4  ;;  %s607_s14 = int_to_ptr.vmem [resolvable:$true] %s606_s14  ;;  %s632_s20 = int_to_ptr.vmem [resolvable:$true] %s631_s20 }
  0x81   : > { %s4717_s9 = sld [smem:[#allocation60_spill]] }
  0x87   : > { %s3156_s29 = scalar_lea.hbm %s4717_s9, 512 }
  0x88   : > { %p3157_p13 = scmp.ne.s32.totalorder %s4717_s9, %s3156_s29  ;;  %p3163_p5 = scmp.lt.u32.totalorder %s3156_s29, %s4717_s9 }
  0x8a   : > { %p3159_p0 = pnand %p3157_p13, %p3910_p8 }
  0x8c   : > { %p3160_p2 = pneg %p3159_p0 }
  0x8e   : > { %p3165_p7 = pnand %p3163_p5, %p3160_p2 }
  0x90   : > { %3168 = shalt.err (!%p3165_p7)
}
  0x91   : > { %s3169_s30 = scalar_lea.vmem %s607_s14, 512  ;;  %p3177_p11 = scmp.lt.s32.totalorder %s607_s14, %s607_s14 }
  0x92   : > { %p3170_p9 = scmp.ne.s32.totalorder %s607_s14, %s3169_s30  ;;  %p3178_p12 = scmp.lt.s32.totalorder %s3169_s30, %s3169_s30 }
  0x94   : > { %p3172_p4 = pnand %p3170_p9, %p3910_p8  ;;  %p3179_p1 = por %p3178_p12, %p3177_p11 }
  0x96   : > { %p3173_p10 = pneg %p3172_p4 }
  0x98   : > { %p3180_p3 = pnand %p3179_p1, %p3173_p10 }
  0x9a   : > { %3183 = shalt.err (!%p3180_p3)
}
  0x9b   : > { %2895 = dma.hbm_to_vmem [thread:$0]  (!%p3894_p6), %s4717_s9, 512, %s607_s14, [#allocation18], %s4669_s26, %s4669_s26, %s4671_s18  }
  0x9c   : > { %s4718_s11 = sld [smem:[#allocation62_spill]] }
  0xa2   : > { %s3184_s0 = scalar_lea.hbm %s4718_s11, 16 }
  0xa3   : > { %p3185_p1 = scmp.ne.s32.totalorder %s4718_s11, %s3184_s0  ;;  %p3191_p0 = scmp.lt.u32.totalorder %s3184_s0, %s4718_s11 }
  0xa5   : > { %p3187_p3 = pnand %p3185_p1, %p3910_p8 }
  0xa7   : > { %p3188_p13 = pneg %p3187_p3 }
  0xa9   : > { %p3193_p2 = pnand %p3191_p0, %p3188_p13 }
  0xab   : > { %3196 = shalt.err (!%p3193_p2)
}
  0xac   : > { %s3197_s25 = scalar_lea.vmem %s632_s20, 16  ;;  %s3204_s14 = scalar_lea.vmem %s632_s20, 32 }
  0xad   : > { %p3198_p5 = scmp.ne.s32.totalorder %s632_s20, %s3197_s25  ;;  %p3205_p4 = scmp.lt.s32.totalorder %s632_s20, %s632_s20 }
  0xae   : > { %p3206_p10 = scmp.lt.s32.totalorder %s3204_s14, %s3197_s25 }
  0xaf   : > { %p3200_p7 = pnand %p3198_p5, %p3910_p8 }
  0xb0   : > { %p3207_p11 = por %p3206_p10, %p3205_p4 }
  0xb1   : > { %p3201_p9 = pneg %p3200_p7 }
  0xb3   : > { %p3208_p12 = pnand %p3207_p11, %p3201_p9 }
  0xb5   : > { %3211 = shalt.err (!%p3208_p12)
}
  0xb6   : > { %2901 = dma.hbm_to_vmem [thread:$0]  (!%p3894_p6), %s4718_s11, 16, %s632_s20, [#allocation21]  }
  0xb7   : > { %s3725_s10 = smov [#allocation23]   ;;  %s3726_s16 = smov [#allocation26]  }
  0xb8   : > { %s652_s12 = sshll.u32 %s3725_s10, 4  ;;  %s676_s0 = sshll.u32 %s3726_s16, 4  ;;  %s653_s12 = int_to_ptr.vmem [resolvable:$true] %s652_s12  ;;  %s677_s0 = int_to_ptr.vmem [resolvable:$true] %s676_s0 }
  0xb9   : > { %s4719_s13 = sld [smem:[#allocation64_spill]] }
  0xbf   : > { %s3212_s19 = scalar_lea.hbm %s4719_s13, 512 }
  0xc0   : > { %p3213_p1 = scmp.ne.s32.totalorder %s4719_s13, %s3212_s19  ;;  %p3219_p0 = scmp.lt.u32.totalorder %s3212_s19, %s4719_s13 }
  0xc2   : > { %p3215_p3 = pnand %p3213_p1, %p3910_p8 }
  0xc4   : > { %p3216_p13 = pneg %p3215_p3 }
  0xc6   : > { %p3221_p2 = pnand %p3219_p0, %p3216_p13 }
  0xc8   : > { %3224 = shalt.err (!%p3221_p2)
}
  0xc9   : > { %s3225_s20 = scalar_lea.vmem %s653_s12, 512  ;;  %p3233_p4 = scmp.lt.s32.totalorder %s653_s12, %s653_s12 }
  0xca   : > { %p3226_p5 = scmp.ne.s32.totalorder %s653_s12, %s3225_s20  ;;  %p3234_p10 = scmp.lt.s32.totalorder %s3225_s20, %s3225_s20 }
  0xcc   : > { %p3228_p7 = pnand %p3226_p5, %p3910_p8  ;;  %p3235_p11 = por %p3234_p10, %p3233_p4 }
  0xce   : > { %p3229_p9 = pneg %p3228_p7 }
  0xd0   : > { %p3236_p12 = pnand %p3235_p11, %p3229_p9 }
  0xd2   : > { %3239 = shalt.err (!%p3236_p12)
}
  0xd3   : > { %2907 = dma.hbm_to_vmem [thread:$0]  (!%p3894_p6), %s4719_s13, 512, %s653_s12, [#allocation24], %s4669_s26, %s4669_s26, %s4671_s18  }
  0xd4   : > { %s4720_s15 = sld [smem:[#allocation66_spill]] }
  0xda   : > { %s3240_s29 = scalar_lea.hbm %s4720_s15, 1024 }
  0xdb   : > { %p3241_p1 = scmp.ne.s32.totalorder %s4720_s15, %s3240_s29  ;;  %p3247_p0 = scmp.lt.u32.totalorder %s3240_s29, %s4720_s15 }
  0xdd   : > { %p3243_p3 = pnand %p3241_p1, %p3910_p8 }
  0xdf   : > { %p3244_p13 = pneg %p3243_p3 }
  0xe1   : > { %p3249_p2 = pnand %p3247_p0, %p3244_p13 }
  0xe3   : > { %3252 = shalt.err (!%p3249_p2)
}
  0xe4   : > { %s3253_s30 = scalar_lea.vmem %s677_s0, 1024  ;;  %p3261_p4 = scmp.lt.s32.totalorder %s677_s0, %s677_s0 }
  0xe5   : > { %p3254_p5 = scmp.ne.s32.totalorder %s677_s0, %s3253_s30  ;;  %p3262_p10 = scmp.lt.s32.totalorder %s3253_s30, %s3253_s30 }
  0xe7   : > { %p3256_p7 = pnand %p3254_p5, %p3910_p8  ;;  %p3263_p11 = por %p3262_p10, %p3261_p4 }
  0xe9   : > { %p3257_p9 = pneg %p3256_p7 }
  0xeb   : > { %p3264_p12 = pnand %p3263_p11, %p3257_p9 }
  0xed   : > { %3267 = shalt.err (!%p3264_p12)
}
  0xee   : > { %2913 = dma.hbm_to_vmem [thread:$0]  (!%p3894_p6), %s4720_s15, 1024, %s677_s0, [#allocation27], %s4669_s26, %s4669_s26, %s4671_s18  }
  0xef   : > { %s3727_s2 = smov [#allocation29]   ;;  %s4721_s17 = sld [smem:[#allocation68_spill]] }
  0xf0   : > { %s701_s10 = sshll.u32 %s3727_s2, 4  ;;  %s702_s10 = int_to_ptr.vmem [resolvable:$true] %s701_s10 }
  0xf5   : > { %s3268_s29 = scalar_lea.hbm %s4721_s17, 16 }
  0xf6   : > { %p3269_p1 = scmp.ne.s32.totalorder %s4721_s17, %s3268_s29  ;;  %p3275_p0 = scmp.lt.u32.totalorder %s3268_s29, %s4721_s17 }
  0xf8   : > { %p3271_p3 = pnand %p3269_p1, %p3910_p8 }
  0xfa   : > { %p3272_p13 = pneg %p3271_p3 }
  0xfc   : > { %p3277_p2 = pnand %p3275_p0, %p3272_p13 }
  0xfe   : > { %3280 = shalt.err (!%p3277_p2)
}
  0xff   : > { %s3281_s0 = scalar_lea.vmem %s702_s10, 16  ;;  %s3288_s30 = scalar_lea.vmem %s702_s10, 32 }
 0x100   : > { %p3282_p5 = scmp.ne.s32.totalorder %s702_s10, %s3281_s0  ;;  %p3289_p4 = scmp.lt.s32.totalorder %s702_s10, %s702_s10 }
 0x101   : > { %p3290_p10 = scmp.lt.s32.totalorder %s3288_s30, %s3281_s0 }
 0x102   : > { %p3284_p7 = pnand %p3282_p5, %p3910_p8 }
 0x103   : > { %p3291_p11 = por %p3290_p10, %p3289_p4 }
 0x104   : > { %p3285_p9 = pneg %p3284_p7 }
 0x106   : > { %p3292_p12 = pnand %p3291_p11, %p3285_p9 }
 0x108   : > { %3295 = shalt.err (!%p3292_p12)
}
 0x109   : > { %2919 = dma.hbm_to_vmem [thread:$0]  (!%p3894_p6), %s4721_s17, 16, %s702_s10, [#allocation30]  }
 0x10a   : > { %s2456_s2 = sadd.s32 4294967294, %s3716_s24   ;;  %s4087_s16 = sadd.s32 1, %s3716_s24  }
 0x10b   : > { %s55_s21 = ssub.s32 %s3716_s24, %s4087_s16  ;;  %s58_s29 = sadd.s32 1, %s3712_s23 }
 0x10c   : > { %p56_p1 = scmp.eq.s32.totalorder %s55_s21, 0  ;;  %p65_p3 = scmp.ne.s32.totalorder %s3712_s23, %s3708_s22 }
 0x10d   : > { %p66_p13 = scmp.eq.s32.totalorder %s3716_s24, 0  ;;  %p71_p0 = scmp.ne.s32.totalorder %s3708_s22, %s3704_s1 }
 0x10e   : > { %s4098_s19 = scalar_select %p56_p1, %s3712_s23, %s58_s29  }
 0x10f   : > { %p67_p2 = por %p66_p13, %p65_p3  ;;  %p4723_p5 = scmp.eq.s32.totalorder %s3878_s3, 0 }
 0x110   : > { %4722 = sst [smem:[#allocation50_spill]] %s4098_s19  ;;  %p483_p9 = scmp.eq.s32.totalorder %s3878_s3, 1 }
 0x111   : > { %p4102_p7 = por %p4723_p5, %p71_p0  ;;  %p489_p4 = scmp.eq.s32.totalorder %s2456_s2, 1 }
 0x112   : > { %p2956_p10 = scmp.lt.s32.totalorder %s3716_s24, 2  ;;  %s4109_s10 = sand.u32 1, %s3712_s23  }
 0x113   : > { %s4724_s28 = scalar_select %p4102_p7, 1, 0 }
 0x114   : > { %p4111_p11 = por %p483_p9, %p65_p3  ;;  %p4115_p12 = por %p489_p4, %p71_p0 }
 0x115   : > { %p4120_p1 = pnand %p2956_p10, %p67_p2  ;;  %s744_s12 = sand.u32 1, %s3716_s24  }
 0x116   : > { %s4725_s25 = scalar_select %p4111_p11, 1, 0 }
 0x117   : > { %s4726_s14 = scalar_select %p4115_p12, 1, 0 }
 0x118   : > { %s4727_s30 = scalar_select %p4120_p1, 1, 0 }
 0x119   : > { %s2478_s20 = sshll.u32 %s3716_s24, 4  ;;  %s747_s2 = scalar_lea.vmem [#allocation5], %s4109_s10 }
 0x11a   : > { %s754_s21 = sshll.u32 %s747_s2, 4  ;;  %s4728_s18 = sld [smem:[#allocation52_spill]]  ;;  %s4132_s21 = int_to_ptr.vmem [resolvable:$true] %s754_s21 }
 0x11b   : > { %s4134_s0 = scalar_lea.sflag [#allocation6], %s744_s12  ;;  %p4140_p13 = pneg %p4120_p1 }
 0x11d   : > { %s4729_s9 = scalar_select %p4140_p13, 1, 0 }
 0x120   : > { %s4130_s5 = scalar_lea.hbm %s4728_s18, %s2478_s20  ;;  %s3301_s2 = scalar_lea.hbm %s4728_s18, 32 }
 0x121   : > { %s3296_s7 = scalar_lea.hbm %s4130_s5, 16  ;;  %p3302_p5 = scmp.lt.u32.totalorder %s4130_s5, %s4728_s18 }
 0x122   : > { %p3297_p3 = scmp.ne.s32.totalorder %s4130_s5, %s3296_s7  ;;  %p3303_p9 = scmp.lt.u32.totalorder %s3301_s2, %s3296_s7 }
 0x123   : > { %p3305_p10 = scmp.lt.u32.totalorder %s3296_s7, %s4130_s5 }
 0x124   : > { %p3299_p0 = pnand %p4140_p13, %p3297_p3  ;;  %p3304_p4 = por %p3303_p9, %p3302_p5 }
 0x126   : > { %p3300_p2 = pneg %p3299_p0  ;;  %p3306_p12 = por %p3305_p10, %p3304_p4 }
 0x128   : > { %p3307_p11 = pnand %p3306_p12, %p3300_p2 }
 0x12a   : > { %3310 = shalt.err (!%p3307_p11)
}
 0x12b   : > { %s3311_s12 = scalar_lea.vmem %s4132_s21, 16  ;;  %s3728_s26 = smov [#allocation5]  }
 0x12c   : > { %p3312_p3 = scmp.ne.s32.totalorder %s4132_s21, %s3311_s12  ;;  %s3316_s20 = sshll.u32 %s3728_s26, 4  ;;  %s3317_s20 = int_to_ptr.vmem [resolvable:$false] %s3316_s20 }
 0x12d   : > { %s3318_s11 = scalar_lea.vmem %s3317_s20, 32  ;;  %p3319_p6 = scmp.lt.s32.totalorder %s4132_s21, %s3317_s20 }
 0x12e   : > { %p3314_p0 = pnand %p3312_p3, %p4140_p13  ;;  %p3320_p8 = scmp.lt.s32.totalorder %s3318_s11, %s3311_s12 }
 0x130   : > { %p3315_p7 = pneg %p3314_p0  ;;  %p3321_p5 = por %p3320_p8, %p3319_p6 }
 0x132   : > { %p3322_p9 = pnand %p3321_p5, %p3315_p7 }
 0x134   : > { %3325 = shalt.err (!%p3322_p9)
}
 0x135   : > { %2929 = dma.hbm_to_vmem [thread:$0]  (!%p4120_p1), %s4130_s5, 16, %s4132_s21, %s4134_s0  }
 0x136   : > { %s4730_s7 = sshll.u32 %s4109_s10, 4  ;;  %s3729_s13 = smov [#allocation10]  }
 0x137   : > { %s765_s2 = scalar_lea.vmem [#allocation7], %s4730_s7  ;;  %s548_s26 = sshll.u32 %s3729_s13, 4  ;;  %s549_s26 = int_to_ptr.vmem [resolvable:$true] %s548_s26 }
 0x138   : > { %s772_s29 = sshll.u32 %s765_s2, 4  ;;  %s4731_s11 = sld [smem:[#allocation55_spill]]  ;;  %s4166_s29 = int_to_ptr.vmem [resolvable:$true] %s772_s29 }
 0x139   : > { %p4732_p8 = scmp.ne.s32.totalorder %s4714_s27, 0 }
 0x13e   : > { %s3326_s15 = scalar_lea.hbm %s4731_s11, 16 }
 0x13f   : > { %p3327_p6 = scmp.ne.s32.totalorder %s4731_s11, %s3326_s15  ;;  %p3333_p12 = scmp.lt.u32.totalorder %s3326_s15, %s4731_s11 }
 0x141   : > { %p3329_p7 = pnand %p3327_p6, %p4732_p8 }
 0x143   : > { %p3330_p11 = pneg %p3329_p7 }
 0x145   : > { %p3335_p2 = pnand %p3333_p12, %p3330_p11 }
 0x147   : > { %3338 = shalt.err (!%p3335_p2)
}
 0x148   : > { %s3339_s13 = scalar_lea.vmem %s549_s26, 16  ;;  %s3346_s7 = scalar_lea.vmem %s549_s26, 32 }
 0x149   : > { %p3340_p4 = scmp.ne.s32.totalorder %s549_s26, %s3339_s13  ;;  %p3347_p0 = scmp.lt.s32.totalorder %s549_s26, %s549_s26 }
 0x14a   : > { %p3348_p5 = scmp.lt.s32.totalorder %s3346_s7, %s3339_s13 }
 0x14b   : > { %p3342_p10 = pnand %p3340_p4, %p4732_p8 }
 0x14c   : > { %p3349_p9 = por %p3348_p5, %p3347_p0 }
 0x14d   : > { %p3343_p3 = pneg %p3342_p10 }
 0x14f   : > { %p3350_p1 = pnand %p3349_p9, %p3343_p3 }
 0x151   : > { %3353 = shalt.err (!%p3350_p1)
}
 0x152   : > { %p4733_p6 = scmp.ne.s32.totalorder %s4712_s4, 0  ;;  %s3730_s15 = smov [#allocation13]  }
 0x153   : > { %s572_s2 = sshll.u32 %s3730_s15, 4  ;;  %s3731_s12 = smov [#allocation16]   ;;  %s573_s2 = int_to_ptr.vmem [resolvable:$true] %s572_s2 }
 0x154   : > { %2880 = dma.hbm_to_vmem [thread:$0]  (!%p4733_p6), %s4731_s11, 16, %s549_s26, [#allocation9]  }
 0x155   : > { %s596_s20 = sshll.u32 %s3731_s12, 4  ;;  %s4734_s6 = sld [smem:[#allocation57_spill]]  ;;  %s4186_s20 = int_to_ptr.vmem [resolvable:$true] %s596_s20 }
 0x15b   : > { %s3354_s13 = scalar_lea.hbm %s4734_s6, 16 }
 0x15c   : > { %p3355_p1 = scmp.ne.s32.totalorder %s4734_s6, %s3354_s13  ;;  %p3361_p12 = scmp.lt.u32.totalorder %s3354_s13, %s4734_s6 }
 0x15e   : > { %p3357_p7 = pnand %p3355_p1, %p4732_p8 }
 0x160   : > { %p3358_p11 = pneg %p3357_p7 }
 0x162   : > { %p3363_p2 = pnand %p3361_p12, %p3358_p11 }
 0x164   : > { %3366 = shalt.err (!%p3363_p2)
}
 0x165   : > { %s3367_s18 = scalar_lea.vmem %s573_s2, 16  ;;  %s3374_s15 = scalar_lea.vmem %s573_s2, 32 }
 0x166   : > { %p3368_p4 = scmp.ne.s32.totalorder %s573_s2, %s3367_s18  ;;  %p3375_p0 = scmp.lt.s32.totalorder %s573_s2, %s573_s2 }
 0x167   : > { %p3376_p5 = scmp.lt.s32.totalorder %s3374_s15, %s3367_s18 }
 0x168   : > { %p3370_p10 = pnand %p3368_p4, %p4732_p8 }
 0x169   : > { %p3377_p9 = por %p3376_p5, %p3375_p0 }
 0x16a   : > { %p3371_p3 = pneg %p3370_p10 }
 0x16c   : > { %p3378_p13 = pnand %p3377_p9, %p3371_p3 }
 0x16e   : > { %3381 = shalt.err (!%p3378_p13)
}
 0x16f   : > { %2886 = dma.hbm_to_vmem [thread:$0]  (!%p4733_p6), %s4734_s6, 16, %s573_s2, [#allocation12]  }
 0x170   : > { %s4735_s8 = sld [smem:[#allocation59_spill]] }
 0x176   : > { %s3382_s13 = scalar_lea.hbm %s4735_s8, 16 }
 0x177   : > { %p3383_p1 = scmp.ne.s32.totalorder %s4735_s8, %s3382_s13  ;;  %p3389_p13 = scmp.lt.u32.totalorder %s3382_s13, %s4735_s8 }
 0x179   : > { %p3385_p7 = pnand %p3383_p1, %p4732_p8 }
 0x17b   : > { %p3386_p11 = pneg %p3385_p7 }
 0x17d   : > { %p3391_p12 = pnand %p3389_p13, %p3386_p11 }
 0x17f   : > { %3394 = shalt.err (!%p3391_p12)
}
 0x180   : > { %s3395_s2 = scalar_lea.vmem %s4186_s20, 16  ;;  %s3402_s15 = scalar_lea.vmem %s4186_s20, 32 }
 0x181   : > { %p3396_p2 = scmp.ne.s32.totalorder %s4186_s20, %s3395_s2  ;;  %p3403_p3 = scmp.lt.s32.totalorder %s4186_s20, %s4186_s20 }
 0x182   : > { %p3404_p0 = scmp.lt.s32.totalorder %s3402_s15, %s3395_s2 }
 0x183   : > { %p3398_p4 = pnand %p3396_p2, %p4732_p8 }
 0x184   : > { %p3405_p5 = por %p3404_p0, %p3403_p3 }
 0x185   : > { %p3399_p10 = pneg %p3398_p4 }
 0x187   : > { %p3406_p9 = pnand %p3405_p5, %p3399_p10 }
 0x189   : > { %3409 = shalt.err (!%p3406_p9)
}
 0x18a   : > { %2892 = dma.hbm_to_vmem [thread:$0]  (!%p4733_p6), %s4735_s8, 16, %s4186_s20, [#allocation15]  }
 0x18b   : > { %s3732_s5 = smov [#allocation19]   ;;  %s3733_s13 = smov [#allocation22]  }
 0x18c   : > { %s620_s21 = sshll.u32 %s3732_s5, 4  ;;  %s642_s7 = sshll.u32 %s3733_s13, 4  ;;  %s621_s21 = int_to_ptr.vmem [resolvable:$true] %s620_s21  ;;  %s4230_s7 = int_to_ptr.vmem [resolvable:$true] %s642_s7 }
 0x18d   : > { %s4736_s18 = sld [smem:[#allocation61_spill]] }
 0x193   : > { %s3410_s2 = scalar_lea.hbm %s4736_s18, 16 }
 0x194   : > { %p3411_p1 = scmp.ne.s32.totalorder %s4736_s18, %s3410_s2  ;;  %p3417_p13 = scmp.lt.u32.totalorder %s3410_s2, %s4736_s18 }
 0x196   : > { %p3413_p7 = pnand %p3411_p1, %p4732_p8 }
 0x198   : > { %p3414_p11 = pneg %p3413_p7 }
 0x19a   : > { %p3419_p12 = pnand %p3417_p13, %p3414_p11 }
 0x19c   : > { %3422 = shalt.err (!%p3419_p12)
}
 0x19d   : > { %s3423_s12 = scalar_lea.vmem %s621_s21, 16  ;;  %s3430_s5 = scalar_lea.vmem %s621_s21, 32 }
 0x19e   : > { %p3424_p2 = scmp.ne.s32.totalorder %s621_s21, %s3423_s12  ;;  %p3431_p3 = scmp.lt.s32.totalorder %s621_s21, %s621_s21 }
 0x19f   : > { %p3432_p0 = scmp.lt.s32.totalorder %s3430_s5, %s3423_s12 }
 0x1a0   : > { %p3426_p4 = pnand %p3424_p2, %p4732_p8 }
 0x1a1   : > { %p3433_p5 = por %p3432_p0, %p3431_p3 }
 0x1a2   : > { %p3427_p10 = pneg %p3426_p4 }
 0x1a4   : > { %p3434_p9 = pnand %p3433_p5, %p3427_p10 }
 0x1a6   : > { %3437 = shalt.err (!%p3434_p9)
}
 0x1a7   : > { %2898 = dma.hbm_to_vmem [thread:$0]  (!%p4733_p6), %s4736_s18, 16, %s621_s21, [#allocation18]  }
 0x1a8   : > { %s4737_s2 = sld [smem:[#allocation63_spill]] }
 0x1ae   : > { %s3438_s15 = scalar_lea.hbm %s4737_s2, 16 }
 0x1af   : > { %p3439_p1 = scmp.ne.s32.totalorder %s4737_s2, %s3438_s15  ;;  %p3445_p13 = scmp.lt.u32.totalorder %s3438_s15, %s4737_s2 }
 0x1b1   : > { %p3441_p7 = pnand %p3439_p1, %p4732_p8 }
 0x1b3   : > { %p3442_p11 = pneg %p3441_p7 }
 0x1b5   : > { %p3447_p12 = pnand %p3445_p13, %p3442_p11 }
 0x1b7   : > { %3450 = shalt.err (!%p3447_p12)
}
 0x1b8   : > { %s3451_s21 = scalar_lea.vmem %s4230_s7, 16  ;;  %s3458_s6 = scalar_lea.vmem %s4230_s7, 32 }
 0x1b9   : > { %p3452_p2 = scmp.ne.s32.totalorder %s4230_s7, %s3451_s21  ;;  %p3459_p3 = scmp.lt.s32.totalorder %s4230_s7, %s4230_s7 }
 0x1ba   : > { %p3460_p0 = scmp.lt.s32.totalorder %s3458_s6, %s3451_s21 }
 0x1bb   : > { %p3454_p4 = pnand %p3452_p2, %p4732_p8 }
 0x1bc   : > { %p3461_p5 = por %p3460_p0, %p3459_p3 }
 0x1bd   : > { %p3455_p10 = pneg %p3454_p4 }
 0x1bf   : > { %p3462_p9 = pnand %p3461_p5, %p3455_p10 }
 0x1c1   : > { %3465 = shalt.err (!%p3462_p9)
}
 0x1c2   : > { %2904 = dma.hbm_to_vmem [thread:$0]  (!%p4733_p6), %s4737_s2, 16, %s4230_s7, [#allocation21]  }
 0x1c3   : > { %s3734_s26 = smov [#allocation25]   ;;  %s3735_s19 = smov [#allocation28]  }
 0x1c4   : > { %s666_s15 = sshll.u32 %s3734_s26, 4  ;;  %s690_s20 = sshll.u32 %s3735_s19, 4  ;;  %s667_s15 = int_to_ptr.vmem [resolvable:$true] %s666_s15  ;;  %s4274_s20 = int_to_ptr.vmem [resolvable:$true] %s690_s20 }
 0x1c5   : > { %s4738_s21 = sld [smem:[#allocation65_spill]] }
 0x1cb   : > { %s3466_s6 = scalar_lea.hbm %s4738_s21, 16 }
 0x1cc   : > { %p3467_p1 = scmp.ne.s32.totalorder %s4738_s21, %s3466_s6  ;;  %p3473_p13 = scmp.lt.u32.totalorder %s3466_s6, %s4738_s21 }
 0x1ce   : > { %p3469_p7 = pnand %p3467_p1, %p4732_p8 }
 0x1d0   : > { %p3470_p11 = pneg %p3469_p7 }
 0x1d2   : > { %p3475_p12 = pnand %p3473_p13, %p3470_p11 }
 0x1d4   : > { %3478 = shalt.err (!%p3475_p12)
}
 0x1d5   : > { %s3479_s17 = scalar_lea.vmem %s667_s15, 16  ;;  %s3486_s26 = scalar_lea.vmem %s667_s15, 32 }
 0x1d6   : > { %p3480_p2 = scmp.ne.s32.totalorder %s667_s15, %s3479_s17  ;;  %p3487_p3 = scmp.lt.s32.totalorder %s667_s15, %s667_s15 }
 0x1d7   : > { %p3488_p0 = scmp.lt.s32.totalorder %s3486_s26, %s3479_s17 }
 0x1d8   : > { %p3482_p4 = pnand %p3480_p2, %p4732_p8 }
 0x1d9   : > { %p3489_p5 = por %p3488_p0, %p3487_p3 }
 0x1da   : > { %p3483_p10 = pneg %p3482_p4 }
 0x1dc   : > { %p3490_p9 = pnand %p3489_p5, %p3483_p10 }
 0x1de   : > { %3493 = shalt.err (!%p3490_p9)
}
 0x1df   : > { %2910 = dma.hbm_to_vmem [thread:$0]  (!%p4733_p6), %s4738_s21, 16, %s667_s15, [#allocation24]  }
 0x1e0   : > { %s4739_s5 = sld [smem:[#allocation67_spill]] }
 0x1e6   : > { %s3494_s6 = scalar_lea.hbm %s4739_s5, 16 }
 0x1e7   : > { %p3495_p1 = scmp.ne.s32.totalorder %s4739_s5, %s3494_s6  ;;  %p3501_p13 = scmp.lt.u32.totalorder %s3494_s6, %s4739_s5 }
 0x1e9   : > { %p3497_p7 = pnand %p3495_p1, %p4732_p8 }
 0x1eb   : > { %p3498_p11 = pneg %p3497_p7 }
 0x1ed   : > { %p3503_p12 = pnand %p3501_p13, %p3498_p11 }
 0x1ef   : > { %3506 = shalt.err (!%p3503_p12)
}
 0x1f0   : > { %s3507_s15 = scalar_lea.vmem %s4274_s20, 16  ;;  %s3514_s8 = scalar_lea.vmem %s4274_s20, 32 }
 0x1f1   : > { %p3508_p2 = scmp.ne.s32.totalorder %s4274_s20, %s3507_s15  ;;  %p3515_p3 = scmp.lt.s32.totalorder %s4274_s20, %s4274_s20 }
 0x1f2   : > { %p3516_p0 = scmp.lt.s32.totalorder %s3514_s8, %s3507_s15 }
 0x1f3   : > { %p3510_p4 = pnand %p3508_p2, %p4732_p8 }
 0x1f4   : > { %p3517_p5 = por %p3516_p0, %p3515_p3 }
 0x1f5   : > { %p3511_p10 = pneg %p3510_p4 }
 0x1f7   : > { %p3518_p9 = pnand %p3517_p5, %p3511_p10 }
 0x1f9   : > { %3521 = shalt.err (!%p3518_p9)
}
 0x1fa   : > { %2916 = dma.hbm_to_vmem [thread:$0]  (!%p4733_p6), %s4739_s5, 16, %s4274_s20, [#allocation27]  }
 0x1fb   : > { %s3736_s12 = smov [#allocation31]   ;;  %s2549_s13 = sshll.u32 %s3716_s24, 8 }
 0x1fc   : > { %s712_s6 = sshll.u32 %s3736_s12, 4  ;;  %s4740_s26 = sld [smem:[#allocation69_spill]]  ;;  %s713_s6 = int_to_ptr.vmem [resolvable:$true] %s712_s6 }
 0x202   : > { %s3522_s15 = scalar_lea.hbm %s4740_s26, 16 }
 0x203   : > { %p3523_p1 = scmp.ne.s32.totalorder %s4740_s26, %s3522_s15  ;;  %p3529_p13 = scmp.lt.u32.totalorder %s3522_s15, %s4740_s26 }
 0x205   : > { %p3525_p7 = pnand %p3523_p1, %p4732_p8 }
 0x207   : > { %p3526_p11 = pneg %p3525_p7 }
 0x209   : > { %p3531_p12 = pnand %p3529_p13, %p3526_p11 }
 0x20b   : > { %3534 = shalt.err (!%p3531_p12)
}
 0x20c   : > { %s3535_s20 = scalar_lea.vmem %s713_s6, 16  ;;  %s3542_s19 = scalar_lea.vmem %s713_s6, 32 }
 0x20d   : > { %p3536_p2 = scmp.ne.s32.totalorder %s713_s6, %s3535_s20  ;;  %p3543_p3 = scmp.lt.s32.totalorder %s713_s6, %s713_s6 }
 0x20e   : > { %p3544_p0 = scmp.lt.s32.totalorder %s3542_s19, %s3535_s20 }
 0x20f   : > { %p3538_p4 = pnand %p3536_p2, %p4732_p8 }
 0x210   : > { %p3545_p5 = por %p3544_p0, %p3543_p3 }
 0x211   : > { %p3539_p10 = pneg %p3538_p4 }
 0x213   : > { %p3546_p9 = pnand %p3545_p5, %p3539_p10 }
 0x215   : > { %3549 = shalt.err (!%p3546_p9)
}
 0x216   : > { %2922 = dma.hbm_to_vmem [thread:$0]  (!%p4733_p6), %s4740_s26, 16, %s713_s6, [#allocation30]  }
 0x217   : > { %s4741_s27 = sld [smem:[#allocation51_spill]]  ;;  %s4742_s15 = sshll.u32 %s4109_s10, 4 }
 0x218   : > { %s727_s8 = scalar_lea.vmem [#allocation2], %s4742_s15  ;;  %s4743_s19 = sld [smem:[#allocation53_spill]] }
 0x219   : > { %s734_s11 = sshll.u32 %s727_s8, 4  ;;  %s724_s6 = scalar_lea.sflag [#allocation3], %s4109_s10  ;;  %s4344_s11 = int_to_ptr.vmem [resolvable:$true] %s734_s11 }
 0x21a   : > { %p4744_p6 = scmp.ne.s32.totalorder %s4729_s9, 0 }
 0x21d   : > { %s4340_s17 = scalar_lea.hbm %s4741_s27, %s2549_s13  ;;  %s3555_s5 = scalar_lea.hbm %s4741_s27, 512 }
 0x21e   : > { %s4349_s2 = scalar_lea.hbm %s4743_s19, %s2549_s13  ;;  %s3550_s12 = scalar_lea.hbm %s4340_s17, 256 }
 0x21f   : > { %p3551_p8 = scmp.ne.s32.totalorder %s4340_s17, %s3550_s12  ;;  %p3556_p11 = scmp.lt.u32.totalorder %s4340_s17, %s4741_s27 }
 0x220   : > { %p3557_p13 = scmp.lt.u32.totalorder %s3555_s5, %s3550_s12  ;;  %p3559_p2 = scmp.lt.u32.totalorder %s3550_s12, %s4340_s17 }
 0x221   : > { %p3553_p1 = pnand %p3551_p8, %p4744_p6 }
 0x222   : > { %p3558_p12 = por %p3557_p13, %p3556_p11 }
 0x223   : > { %p3554_p7 = pneg %p3553_p1 }
 0x224   : > { %p3560_p4 = por %p3559_p2, %p3558_p12 }
 0x226   : > { %p3561_p10 = pnand %p3560_p4, %p3554_p7 }
 0x228   : > { %3564 = shalt.err (!%p3561_p10)
}
 0x229   : > { %s3565_s13 = scalar_lea.vmem %s4344_s11, 256  ;;  %s3737_s8 = smov [#allocation2]  }
 0x22a   : > { %p3566_p3 = scmp.ne.s32.totalorder %s4344_s11, %s3565_s13  ;;  %s3570_s4 = sshll.u32 %s3737_s8, 4  ;;  %s3571_s4 = int_to_ptr.vmem [resolvable:$false] %s3570_s4 }
 0x22b   : > { %s3572_s21 = scalar_lea.vmem %s3571_s4, 512  ;;  %p3573_p9 = scmp.lt.s32.totalorder %s4344_s11, %s3571_s4 }
 0x22c   : > { %p3568_p0 = pnand %p3566_p3, %p4744_p6  ;;  %p3574_p8 = scmp.lt.s32.totalorder %s3572_s21, %s3565_s13 }
 0x22e   : > { %p3569_p5 = pneg %p3568_p0  ;;  %p3575_p1 = por %p3574_p8, %p3573_p9 }
 0x230   : > { %p3576_p11 = pnand %p3575_p1, %p3569_p5 }
 0x232   : > { %3579 = shalt.err (!%p3576_p11)
}
 0x233   : > { %p4745_p7 = scmp.ne.s32.totalorder %s4727_s30, 0  ;;  %s4746_s5 = smov 8  }
 0x234   : > { %s4747_s20 = smov 128   ;;  %s3580_s12 = scalar_lea.hbm %s4349_s2, 256 }
 0x235   : > { %2926 = dma.hbm_to_vmem [thread:$0]  (!%p4745_p7), %s4340_s17, 256, %s4344_s11, %s724_s6, %s4747_s20, %s4747_s20, %s4746_s5  }
 0x236   : > { %p3581_p13 = scmp.ne.s32.totalorder %s4349_s2, %s3580_s12  ;;  %s3585_s15 = scalar_lea.hbm %s4743_s19, 512 }
 0x237   : > { %p3586_p4 = scmp.lt.u32.totalorder %s4349_s2, %s4743_s19  ;;  %p3587_p10 = scmp.lt.u32.totalorder %s3585_s15, %s3580_s12 }
 0x238   : > { %p3583_p12 = pnand %p3581_p13, %p4744_p6  ;;  %p3589_p0 = scmp.lt.u32.totalorder %s3580_s12, %s4349_s2 }
 0x239   : > { %p3588_p3 = por %p3587_p10, %p3586_p4 }
 0x23a   : > { %p3584_p2 = pneg %p3583_p12 }
 0x23b   : > { %p3590_p5 = por %p3589_p0, %p3588_p3 }
 0x23d   : > { %p3591_p9 = pnand %p3590_p5, %p3584_p2 }
 0x23f   : > { %3594 = shalt.err (!%p3591_p9)
}
 0x240   : > { %s3595_s10 = scalar_lea.vmem %s4166_s29, 256  ;;  %s3738_s17 = smov [#allocation7]  }
 0x241   : > { %p3596_p8 = scmp.ne.s32.totalorder %s4166_s29, %s3595_s10  ;;  %s3600_s11 = sshll.u32 %s3738_s17, 4  ;;  %s3601_s11 = int_to_ptr.vmem [resolvable:$false] %s3600_s11 }
 0x242   : > { %s3602_s6 = scalar_lea.vmem %s3601_s11, 512  ;;  %p3603_p13 = scmp.lt.s32.totalorder %s4166_s29, %s3601_s11 }
 0x243   : > { %p3598_p1 = pnand %p3596_p8, %p4744_p6  ;;  %p3604_p12 = scmp.lt.s32.totalorder %s3602_s6, %s3595_s10 }
 0x245   : > { %p3599_p11 = pneg %p3598_p1  ;;  %p3605_p4 = por %p3604_p12, %p3603_p13 }
 0x247   : > { %p3606_p10 = pnand %p3605_p4, %p3599_p11 }
 0x249   : > { %3609 = shalt.err (!%p3606_p10)
}
 0x24a   : > { %2932 = dma.hbm_to_vmem [thread:$0]  (!%p4745_p7), %s4349_s2, 256, %s4166_s29, %s4134_s0, %s4747_s20, %s4747_s20, %s4746_s5  }
 0x24b   : > { %s4748_s9 = sld [smem:[#allocation49_spill]] }
 0x251   : > { %p4749_p6 = scmp.ne.s32.totalorder %s4748_s9, 0 }
 0x252   : > { %s4406_s4 = sand.u32 (!%p4749_p6), 1, %s3708_s22   ;;  %p4750_p2 = scmp.ne.s32.totalorder (!%p4749_p6), %s4724_s28, 0 }
 0x253   : > { %784 = sbr.rel (%p4749_p6) target bundleno = 3065 (0xbf9), region = 96  ;;  %s4409_s21 = sshll.u32 (!%p4749_p6), %s4406_s4, 4 }
 0x254   : > { %s787_s30 = scalar_lea.sflag (!%p4749_p6), [#allocation3], %s4406_s4  ;;  %s790_s12 = scalar_lea.vmem (!%p4749_p6), [#allocation2], %s4409_s21 }
 0x25a   : > { %3655 = dma.done.wait (%p4750_p2), %s787_s30, 256  }
 0x25b   : > { %3657 = vsyncadd (%p4750_p2), %s787_s30, 4294967040  ;;  %s795_s0 = sand.u32 1, %s3878_s3   ;;  %s798_s2 = scalar_lea.vmem [#allocation5], %s4406_s4 }
 0x25c   : > { %s796_s29 = scalar_lea.sflag [#allocation6], %s795_s0 }
 0x25d   : > { %3659 = dma.done.wait (%p4750_p2), %s796_s29, 272  }
 0x25e   : > { %3661 = vsyncadd (%p4750_p2), %s796_s29, 4294967024  ;;  %s807_s5 = scalar_lea.vmem [#allocation7], %s4409_s21  ;;  %p4751_p7 = scmp.eq.s32.totalorder %s3878_s3, 0 }
 0x260   : > { %3663 = dma.done.wait (%p4751_p7), [#allocation9], 528   ;;  %p4752_p3 = pmov %p4751_p7 }
 0x262   : > { %3665 = vsyncadd (%p4752_p3), [#allocation9], 4294966768  ;;  %p4753_p0 = pmov %p4752_p3 }
 0x264   : > { %3667 = dma.done.wait (%p4753_p0), [#allocation12], 528   ;;  %p4754_p5 = pmov %p4753_p0 }
 0x265   : > { %p4755_p9 = pmov %p4753_p0 }
 0x266   : > { %3669 = vsyncadd (%p4754_p5), [#allocation12], 4294966768 }
 0x267   : > { %3671 = dma.done.wait (%p4755_p9), [#allocation15], 528   ;;  %p4756_p8 = pmov %p4753_p0 }
 0x268   : > { %p4757_p1 = pmov %p4753_p0 }
 0x269   : > { %3673 = vsyncadd (%p4756_p8), [#allocation15], 4294966768 }
 0x26a   : > { %3675 = dma.done.wait (%p4757_p1), [#allocation18], 528   ;;  %p4758_p11 = pmov %p4753_p0 }
 0x26b   : > { %p4759_p13 = pmov %p4753_p0 }
 0x26c   : > { %3677 = vsyncadd (%p4758_p11), [#allocation18], 4294966768 }
 0x26d   : > { %3679 = dma.done.wait (%p4759_p13), [#allocation21], 32   ;;  %p4760_p12 = pmov %p4753_p0 }
 0x26e   : > { %p4761_p4 = pmov %p4753_p0 }
 0x26f   : > { %3681 = vsyncadd (%p4760_p12), [#allocation21], 4294967264 }
 0x270   : > { %3683 = dma.done.wait (%p4761_p4), [#allocation24], 528   ;;  %p4762_p10 = pmov %p4753_p0 }
 0x271   : > { %p4763_p6 = pmov %p4753_p0 }
 0x272   : > { %3685 = vsyncadd (%p4762_p10), [#allocation24], 4294966768 }
 0x273   : > { %3687 = dma.done.wait (%p4763_p6), [#allocation27], 1040   ;;  %p4764_p2 = pmov %p4753_p0 }
 0x274   : > { %p4765_p7 = pmov %p4753_p0 }
 0x275   : > { %3689 = vsyncadd (%p4764_p2), [#allocation27], 4294966256 }
 0x276   : > { %3691 = dma.done.wait (%p4765_p7), [#allocation30], 32   ;;  %p4766_p3 = pmov %p4753_p0 }
 0x277   : > { %vm962_vm0 = vcmask 261120   ;;  %v951_v0 = vld [vmem:[#allocation8] sm:$0xff]  ;;  %v952_v1 = vld [vmem:[#allocation8 + $0x8] sm:$0xff]  ;;  %v953_v2 = vld [vmem:[#allocation8 + $0x10] sm:$0xff]  ;;  %vm1222_vm1 = vcmask 130048   ;;  %s3739_s28 = smov 112   ;;  %v1217_v39 = vlaneseq }
 0x278   : > { %3693 = vsyncadd (%p4766_p3), [#allocation30], 4294967264  ;;  %v2716_v3 = vpack.c.bf16 %v952_v1, %v951_v0  ;;  %v954_v4 = vld [vmem:[#allocation8 + $0x18] sm:$0xff]  ;;  %v1044_v7 = vld [vmem:[#allocation11] sm:$0xff]  ;;  %v3740_v43 = vmov 0.0   ;;  %s2502_s20 = sshll.u32 %s4406_s4, 5 }
 0x279   : > { %v4458_v5 = vld [vmem:[%s790_s12] sm:$0xff]  ;;  %v2720_v6 = vpack.c.bf16 %v954_v4, %v953_v2  ;;  %v4466_v12 = vld [vmem:[%s790_s12 + $0x8] sm:$0xff]  ;;  %vm4478_vm2 = vmpackc.low %vm1222_vm1, %vm1222_vm1  ;;  %v1218_v41 = vshrl.u32 %v1217_v39, 7  ;;  %s4509_s18 = scalar_lea.vmem [#allocation33], %s2502_s20  ;;  %vm1963_vm8 = vcmask 523264   ;;  %s2551_s7 = sshll.u32 %s3878_s3, 8 }
 0x27a   : > { %2619 = vmatprep.mubr.msk.f32.mxu1 %vm962_vm0, %v4458_v5  ;;  %v1045_v8 = vld [vmem:[#allocation11 + $0x8] sm:$0xff]  ;;  %2641 = vmatprep.mubr.msk.f32.mxu0 %vm962_vm0, %v4458_v5  ;;  %v1046_v10 = vld [vmem:[#allocation11 + $0x10] sm:$0xff]  ;;  %v1047_v11 = vld [vmem:[#allocation11 + $0x18] sm:$0xff]  ;;  %s934_s15 = scalar_lea.vmem [#allocation32], %s4409_s21  ;;  %s4769_s17 = sld [smem:[#allocation70_spill]] }
 0x27b   : > { %2717 = vmatprep.subr.bf16.mxu1 %v2716_v3  ;;  %v2724_v9 = vpack.c.bf16 %v1045_v8, %v1044_v7  ;;  %v2728_v13 = vpack.c.bf16 %v1047_v11, %v1046_v10  ;;  %v2503_v14 = vld [vmem:[#allocation10] ss:$0 sm:$0xff]  ;;  %v2506_v19 = vld [vmem:[#allocation13] ss:$0 sm:$0xff]  ;;  %v1130_v27 = vld [vmem:[#allocation14] sm:$0xff]  ;;  %v1219_v42 = vsub.s32 0, %v1218_v41 }
 0x27c   : > { %2719 = vmatpush3.bf16.msra.mxu1 %v2716_v3  ;;  %v1131_v28 = vld [vmem:[#allocation14 + $0x8] sm:$0xff]  ;;  %v1132_v29 = vld [vmem:[#allocation14 + $0x10] sm:$0xff]  ;;  %v1133_v31 = vld [vmem:[#allocation14 + $0x18] sm:$0xff]  ;;  %s2114_s13 = sshll.u32 %s934_s15, 4  ;;  %s2096_s6 = scalar_lea.sflag [#allocation4], %s4406_s4  ;;  %s4565_s13 = int_to_ptr.vmem [resolvable:$true] %s2114_s13 }
 0x27d   : > { %2721 = vmatprep.subr.bf16.mxu1 %v2720_v6  ;;  %v2732_v30 = vpack.c.bf16 %v1131_v28, %v1130_v27  ;;  %v2736_v32 = vpack.c.bf16 %v1133_v31, %v1132_v29  ;;  %v944_v40 = vld [vmem:[%s798_s2] sm:$0x1]  ;;  %s3610_s9 = scalar_lea.vmem %s4565_s13, 256  ;;  %p4770_p5 = scmp.ne.s32.totalorder %s4725_s25, 0 }
 0x27e   : > { %vm947_vm3 = vcmp.gt.f32.partialorder %v944_v40, 0.5  ;;  %p3611_p0 = scmp.ne.s32.totalorder %s4565_s13, %s3610_s9  ;;  %s3742_s21 = smov [#allocation32]  }
 0x27f   : > { %2733 = vmatprep.subr.bf16.mxu0 %v2732_v30  ;;  %v948_v44 = vsel %vm947_vm3, -1e+09, %v3740_v43  ;;  %v1416_v43 = vld [vmem:[#allocation17 + $0x8] sm:$0xff]  ;;  %s3614_s30 = sshll.u32 %s3742_s21, 4  ;;  %s3615_s30 = int_to_ptr.vmem [resolvable:$false] %s3614_s30 }
 0x280   : > { %2723 = vmatpush3.bf16.msra.mxu1 %v2720_v6  ;;  %2735 = vmatpush3.bf16.msra.mxu0 %v2732_v30  ;;  %v1220_v45 = vrot.slane %v948_v44, %v1219_v42  ;;  %v2509_v6 = vld [vmem:[#allocation16] ss:$0 sm:$0xff]  ;;  %v1415_v42 = vld [vmem:[#allocation17] sm:$0xff]  ;;  %s4563_s11 = scalar_lea.hbm %s4769_s17, %s2551_s7  ;;  %p3612_p9 = pnand %p3611_p0, %p4770_p5 }
 0x281   : > { %2725 = vmatprep.subr.bf16.mxu1 %v2724_v9  ;;  %2737 = vmatprep.subr.bf16.mxu0 %v2736_v32  ;;  %v2764_v44 = vpack.c.bf16 %v1416_v43, %v1415_v42  ;;  %s3616_s12 = scalar_lea.vmem %s3615_s30, 512  ;;  %p3617_p1 = scmp.lt.s32.totalorder %s4565_s13, %s3615_s30 }
 0x282   : > { %p3613_p8 = pneg %p3612_p9  ;;  %p3618_p11 = scmp.lt.s32.totalorder %s3616_s12, %s3610_s9 }
 0x283   : > { %2620 = vmatmul.mubr.msk.f32.vlgmr.msra.gmra.mrb[0].mxu1 %vm962_vm0, %v4466_v12 }
 0x284   : > { %2727 = vmatpush3.bf16.msra.mxu1 %v2724_v9  ;;  %2630 = vmatprep.mubr.msk.f32.mxu1 %vm962_vm0, %v4458_v5  ;;  %p3619_p13 = por %p3618_p11, %p3617_p1 }
 0x285   : > { %2729 = vmatprep.subr.bf16.mxu1 %v2728_v13  ;;  %2739 = vmatpush3.bf16.msra.mxu0 %v2736_v32  ;;  %v1622_v32 = vld [vmem:[#allocation17 + $0x10] sm:$0xff] }
 0x286   : > { %p3620_p12 = pnand %p3619_p13, %p3613_p8 }
 0x288   : > { %2731 = vmatpush3.bf16.msra.mxu1 %v2728_v13  ;;  %2642 = vmatmul.mubr.msk.f32.vlgmr.msra.gmra.mrb[0].mxu0 %vm962_vm0, %v4466_v12 }
 0x28b   : > { %2631 = vmatmul.mubr.msk.f32.vlgmr.msra.gmra.mrb[2].mxu1 %vm962_vm0, %v4466_v12 }
 0x356   : > { %v2621_v15 = vpop.f32.mrb[0].mxu1 }
 0x357   : > { %v1041_v16 = vadd.f32 %v2621_v15, %v2503_v14  ;;  %v1035_v17 = vpop.f32.mrb[1].mxu1 }
 0x358   : > { %v1036_v18 = vadd.f32 %v2503_v14, %v1035_v17 }
 0x359   : > { %1419 = vrot.lane.b32.xlu1 %v1041_v16, %s3739_s28 }
 0x35a   : > { %2648 = vmatprep.mubr.msk.f32.mxu1 %vm1222_vm1, %v1036_v18 }
 0x35b   : > { %v2643_v4 = vpop.f32.mrb[0].mxu0 }
 0x35c   : > { %v1207_v7 = vpop.f32.mrb[1].mxu0  ;;  %v1213_v8 = vadd.f32 %v2643_v4, %v2509_v6 }
 0x35d   : > { %v1208_v9 = vadd.f32 %v2509_v6, %v1207_v7  ;;  %v945_v6 = vld [vmem:[%s807_s5] sm:$0xff] }
 0x35e   : > { %v2632_v20 = vpop.f32.mrb[2].mxu1  ;;  %vm949_vm5 = vcmp.gt.f32.partialorder %v945_v6, 0.5 }
 0x35f   : > { %v1127_v21 = vadd.f32 %v2632_v20, %v2506_v19  ;;  %v1121_v22 = vpop.f32.mrb[3].mxu1  ;;  %v3041_v10 = vpack.i.bf16 %v1213_v8, %v1208_v9  ;;  %v2746_v11 = vpack.c.bf16 %v1213_v8, %v1208_v9  ;;  %v1854_v8 = vld [vmem:[#allocation23] sm:$0xff]  ;;  %v1855_v9 = vld [vmem:[#allocation23 + $0x8] sm:$0xff] }
 0x360   : > { %v1122_v23 = vadd.f32 %v2506_v19, %v1121_v22 }
 0x361   : > { %2747 = vmatprep.subr.bf16.mxu0 %v2746_v11 }
 0x362   : > { %v2740_v25 = vpack.c.bf16 %v1127_v21, %v1122_v23  ;;  %v3036_v26 = vpack.i.bf16 %v1127_v21, %v1122_v23  ;;  %2749 = vmatpush3.bf16.msra.mxu0 %v2746_v11  ;;  %v1856_v11 = vld [vmem:[#allocation23 + $0x10] sm:$0xff] }
 0x364   : > { %3037 = vrot.lane.b32.xlu0 %v3036_v26, %s3739_s28  ;;  %2742 = vmatprep.subr.msk.bf16.mxu1 %vm4478_vm2, %v2740_v25 }
 0x365   : > { %2745 = vmatpush3.bf16.xpose.msk.msra.mxu1 %vm4478_vm2, %v2740_v25 }
 0x368   : > { %1417 = vrot.lane.b32.xlu0 %v1036_v18, %s3739_s28 }
 0x36c   : > { %2649 = vmatmul.mubr.msk.f32.vlgmr.msra.gmra.mrb[4].mxu1 %vm1222_vm1, %v1041_v16 }
 0x3cb   : > { %v1420_v38 = vpop.permute.xlu1 %1419 }
 0x3d6   : > { %v3038_v33 = vpop.permute.xlu0 %3037 }
 0x3d7   : > { %v3040_v34 = vunpack.i.h.bf16 %v3038_v33  ;;  %v3039_v35 = vunpack.i.l.bf16 %v3038_v33  ;;  %v1623_v33 = vld [vmem:[#allocation17 + $0x18] sm:$0xff] }
 0x3d9   : > { %v2750_v36 = vpack.c.bf16 %v3040_v34, %v3039_v35 }
 0x3da   : > { %v1418_v37 = vpop.permute.xlu0 %1417 }
 0x3db   : > { %2752 = vmatprep.subr.msk.bf16.mxu1 %vm4478_vm2, %v2750_v36  ;;  %2662 = vmatprep.mubr.msk.f32.mxu1 %vm1222_vm1, %v1418_v37  ;;  %v2760_v37 = vpack.c.bf16 %v1623_v33, %v1622_v32 }
 0x3dc   : > { %2755 = vmatpush3.bf16.xpose.msk.msra.mxu1 %vm4478_vm2, %v2750_v36 }
 0x3e3   : > { %2663 = vmatmul.mubr.msk.f32.vlgmr.msra.gmra.mrb[6].mxu1 %vm1222_vm1, %v1420_v38 }
 0x43f   : > { %v2650_v46 = vpop.f32.mrb[4].mxu1 }
 0x440   : > { %v1307_v47 = vadd.f32 %v2650_v46, %v1220_v45  ;;  %v1301_v48 = vpop.f32.mrb[5].mxu1 }
 0x441   : > { %v1302_v49 = vadd.f32 %v1301_v48, %v1220_v45 }
 0x442   : > { %v1313_v50 = vsel %vm1222_vm1, %v1307_v47, -inf }
 0x443   : > { %1314 = vmax.xlane.f32.xlu0 %v1313_v50  ;;  %v1310_v51 = vsel %vm1222_vm1, %v1302_v49, -inf }
 0x444   : > { %1311 = vmax.xlane.f32.xlu1 %v1310_v51 }
 0x4b6   : > { %v2664_v52 = vpop.f32.mrb[6].mxu1 }
 0x4b7   : > { %v1505_v53 = vadd.f32 %v2664_v52, %v1220_v45  ;;  %v1499_v54 = vpop.f32.mrb[7].mxu1 }
 0x4b8   : > { %v1500_v55 = vadd.f32 %v1499_v54, %v1220_v45 }
 0x4b9   : > { %v1511_v56 = vsel %vm1222_vm1, %v1505_v53, -inf }
 0x4ba   : > { %1512 = vmax.xlane.f32.xlu1 %v1511_v56  ;;  %v1508_v57 = vsel %vm1222_vm1, %v1500_v55, -inf }
 0x4bb   : > { %1509 = vmax.xlane.f32.xlu0 %v1508_v57 }
 0x4d0   : > { %v1315_v58 = vpop.xlane.xlu0 %1314 }
 0x4d1   : > { %v1317_v59 = vsub.f32 %v1307_v47, %v1315_v58  ;;  %v1312_v60 = vpop.xlane.xlu1 %1311  ;;  %v946_v58 = vld [vmem:[%s807_s5 + $0x8] sm:$0xff] }
 0x4d2   : > { %v1316_v61 = vsub.f32 %v1302_v49, %v1312_v60  ;;  %v2530_v49 = vld [vmem:[#allocation19] ss:$0 sm:$0xff]  ;;  %vm950_vm4 = vcmp.gt.f32.partialorder %v946_v58, 0.5 }
 0x4d3   : > { %v1320_v62 = vmul.f32 1.442695, %v1317_v59  ;;  %v3741_v59 = vmov 0  }
 0x4d4   : > { %v1318_v63 = vmul.f32 1.442695, %v1316_v61  ;;  %3047 = vset.pattern.permute.xlu0 %v3741_v59  ;;  %3046 = vset.pattern.permute.xlu1 %v3741_v59  ;;  %v1843_v60 = vsel %vm950_vm4, 1, %v3741_v59  ;;  %v1842_v7 = vsel %vm949_vm5, 1, %v3741_v59 }
 0x4d5   : > { %3048 = vpow2.f32 %v1320_v62 }
 0x4d6   : > { %3050 = vpow2.f32 %v1318_v63 }
 0x4df   : > { %v3049_v0 = vpop.eup %3048 }
 0x4e0   : > { %v3051_v1 = vpop.eup %3050  ;;  %v1325_v2 = vsel %vm1222_vm1, %v3049_v0, 0.0 }
 0x4e1   : > { %1326 = vadd.xlane.f32.xlu1 %v1325_v2  ;;  %v1322_v3 = vsel %vm1222_vm1, %v3051_v1, 0.0 }
 0x4e2   : > { %1323 = vadd.xlane.f32.xlu0 %v1322_v3 }
 0x547   : > { %v1513_v13 = vpop.xlane.xlu1 %1512 }
 0x548   : > { %v1515_v14 = vsub.f32 %v1505_v53, %v1513_v13  ;;  %v1510_v15 = vpop.xlane.xlu0 %1509  ;;  %v1857_v13 = vld [vmem:[#allocation23 + $0x18] sm:$0xff] }
 0x549   : > { %v1514_v16 = vsub.f32 %v1500_v55, %v1510_v15  ;;  %v1948_v15 = vld [vmem:[#allocation26] sm:$0xff] }
 0x54a   : > { %v1518_v17 = vmul.f32 1.442695, %v1515_v14  ;;  %v2772_v14 = vpack.c.bf16 %v1857_v13, %v1856_v11 }
 0x54b   : > { %v1516_v18 = vmul.f32 1.442695, %v1514_v16  ;;  %v1949_v16 = vld [vmem:[#allocation26 + $0x8] sm:$0xff] }
 0x54c   : > { %3052 = vpow2.f32 %v1518_v17  ;;  %v1950_v17 = vld [vmem:[#allocation26 + $0x10] sm:$0xff] }
 0x54d   : > { %3054 = vpow2.f32 %v1516_v18  ;;  %v2776_v18 = vpack.c.bf16 %v1949_v16, %v1948_v15  ;;  %v2539_v16 = vld [vmem:[#allocation29] ss:$0 sm:$0xff] }
 0x556   : > { %v3053_v19 = vpop.eup %3052 }
 0x557   : > { %v3055_v20 = vpop.eup %3054  ;;  %v1523_v21 = vsel %vm1222_vm1, %v3053_v19, 0.0 }
 0x558   : > { %1524 = vadd.xlane.f32.xlu1 %v1523_v21  ;;  %v1520_v22 = vsel %vm1222_vm1, %v3055_v20, 0.0  ;;  %v1952_v21 = vld [vmem:[#allocation26 + $0x20] sm:$0xff] }
 0x559   : > { %1521 = vadd.xlane.f32.xlu0 %v1520_v22  ;;  %v1953_v22 = vld [vmem:[#allocation26 + $0x28] sm:$0xff] }
 0x56e   : > { %v1327_v23 = vpop.xlane.xlu1 %1326 }
 0x56f   : > { %3056 = vrcp.f32 %v1327_v23  ;;  %v1324_v24 = vpop.xlane.xlu0 %1323  ;;  %3042 = vrot.lane.b32.xlu0 %v3041_v10, %s3739_s28  ;;  %v2768_v10 = vpack.c.bf16 %v1855_v9, %v1854_v8  ;;  %v2784_v23 = vpack.c.bf16 %v1953_v22, %v1952_v21 }
 0x570   : > { %3058 = vrcp.f32 %v1324_v24 }
 0x571   : > { %2769 = vmatprep.subr.bf16.mxu1 %v2768_v10 }
 0x572   : > { %2771 = vmatpush3.bf16.msra.mxu1 %v2768_v10 }
 0x573   : > { %1848 = vperm.xlu0 %3047, %v1843_v60   ;;  %2773 = vmatprep.subr.bf16.mxu1 %v2772_v14 }
 0x576   : > { %2775 = vmatpush3.bf16.msra.mxu1 %v2772_v14 }
 0x579   : > { %v3057_v25 = vpop.eup %3056 }
 0x57a   : > { %v3059_v26 = vpop.eup %3058  ;;  %v1331_v27 = vmul.f32 %v3057_v25, %v3049_v0 }
 0x57b   : > { %v1330_v28 = vmul.f32 %v3059_v26, %v3051_v1 }
 0x57c   : > { %1333 = vst.msk [vmem:[%s4509_s18 + $0x8] sm:$0xff] %vm1222_vm1, %v1331_v27 }
 0x57d   : > { %1332 = vst.msk [vmem:[%s4509_s18] sm:$0xff] %vm1222_vm1, %v1330_v28  ;;  %2655 = vmatprep.mubr.msk.f32.mxu0 %vm1222_vm1, %v1330_v28 }
 0x57e   : > { %2656 = vmatmul.mubr.msk.f32.vlgmr.msra.gmra.mrb[2].mxu0 %vm1222_vm1, %v1331_v27 }
 0x5e5   : > { %v1525_v29 = vpop.xlane.xlu1 %1524 }
 0x5e6   : > { %3060 = vrcp.f32 %v1525_v29  ;;  %v1522_v30 = vpop.xlane.xlu0 %1521 }
 0x5e7   : > { %3062 = vrcp.f32 %v1522_v30 }
 0x5ea   : > { %v3043_v31 = vpop.permute.xlu0 %3042 }
 0x5eb   : > { %v3045_v34 = vunpack.i.h.bf16 %v3043_v31  ;;  %v3044_v35 = vunpack.i.l.bf16 %v3043_v31  ;;  %v2531_v31 = vld [vmem:[#allocation20] ss:$0 sm:$0xff] }
 0x5ed   : > { %v2756_v36 = vpack.c.bf16 %v3045_v34, %v3044_v35  ;;  %v2532_v35 = vld [vmem:[#allocation22] ss:$0 sm:$0xff] }
 0x5ef   : > { %2757 = vmatprep.subr.bf16.mxu0 %v2756_v36 }
 0x5f0   : > { %v3061_v38 = vpop.eup %3060  ;;  %2759 = vmatpush3.bf16.msra.mxu0 %v2756_v36 }
 0x5f1   : > { %v3063_v39 = vpop.eup %3062  ;;  %v1529_v40 = vmul.f32 %v3061_v38, %v3053_v19  ;;  %2761 = vmatprep.subr.bf16.mxu0 %v2760_v37  ;;  %v1951_v19 = vld [vmem:[#allocation26 + $0x18] sm:$0xff] }
 0x5f2   : > { %v1528_v41 = vmul.f32 %v3063_v39, %v3055_v20  ;;  %v2780_v20 = vpack.c.bf16 %v1951_v19, %v1950_v17  ;;  %v4539_v38 = vpop.permute.xlu0 %1848 }
 0x5f3   : > { %2523 = vst.msk [vmem:[%s4509_s18 + $0x18] sm:$0xff] %vm1222_vm1, %v1529_v40  ;;  %vm1851_vm7 = vcmp.eq.s32.totalorder %v4539_v38, 1 }
 0x5f4   : > { %2522 = vst.msk [vmem:[%s4509_s18 + $0x10] sm:$0xff] %vm1222_vm1, %v1528_v41  ;;  %2669 = vmatprep.mubr.msk.f32.mxu0 %vm1222_vm1, %v1528_v41 }
 0x5f5   : > { %2670 = vmatmul.mubr.msk.f32.vlgmr.msra.gmra.mrb[4].mxu0 %vm1222_vm1, %v1529_v40 }
 0x5f6   : > { %2763 = vmatpush3.bf16.msra.mxu0 %v2760_v37 }
 0x5f7   : > { %2765 = vmatprep.subr.bf16.mxu0 %v2764_v44 }
 0x651   : > { %v2657_v45 = vpop.f32.mrb[2].mxu0 }
 0x652   : > { %v1406_v46 = vpop.f32.mrb[3].mxu0 }
 0x6c8   : > { %v2671_v47 = vpop.f32.mrb[4].mxu0 }
 0x6c9   : > { %v1613_v48 = vpop.f32.mrb[5].mxu0 }
 0x6ca   : > { %2676 = vmatprep.mubr.msk.f32.mxu0 %vm1222_vm1, %v1613_v48 }
 0x6cb   : > { %2677 = vmatmul.mubr.msk.f32.vlgmr.msra.gmra.mrb[6].mxu0 %vm1222_vm1, %v2671_v47  ;;  %v2533_v47 = vld [vmem:[#allocation25] ss:$0 sm:$0xff] }
 0x6cc   : > { %2767 = vmatpush3.bf16.msra.mxu0 %v2764_v44  ;;  %2683 = vmatprep.mubr.msk.f32.mxu0 %vm1222_vm1, %v1406_v46  ;;  %v1954_v44 = vld [vmem:[#allocation26 + $0x30] sm:$0xff] }
 0x6cd   : > { %2777 = vmatprep.subr.bf16.mxu0 %v2776_v18 }
 0x6d3   : > { %2684 = vmatmul.mubr.msk.f32.vlgmr.msra.gmra.mrb[6].mxu0 %vm1222_vm1, %v2657_v45  ;;  %v1955_v45 = vld [vmem:[#allocation26 + $0x38] sm:$0xff] }
 0x6d4   : > { %2779 = vmatpush3.bf16.msra.mxu0 %v2776_v18  ;;  %v2788_v46 = vpack.c.bf16 %v1955_v45, %v1954_v44  ;;  %v2540_v18 = vld [vmem:[#allocation31] ss:$0 sm:$0xff] }
 0x6d5   : > { %2781 = vmatprep.subr.bf16.mxu0 %v2780_v20 }
 0x6d8   : > { %2783 = vmatpush3.bf16.msra.mxu0 %v2780_v20 }
 0x6d9   : > { %2785 = vmatprep.subr.bf16.mxu0 %v2784_v23 }
 0x6dc   : > { %2787 = vmatpush3.bf16.msra.mxu0 %v2784_v23 }
 0x6dd   : > { %2789 = vmatprep.subr.bf16.mxu0 %v2788_v46 }
 0x6e0   : > { %2791 = vmatpush3.bf16.msra.mxu0 %v2788_v46 }
 0x7a6   : > { %v2685_v50 = vpop.f32.mrb[6].mxu0 }
 0x7a7   : > { %v1777_v51 = vpop.f32.mrb[7].mxu0  ;;  %v1794_v52 = vadd.f32 %v2685_v50, %v2530_v49 }
 0x7a8   : > { %v1793_v53 = vadd.f32 %v2530_v49, %v1777_v51 }
 0x7a9   : > { %v1796_v56 = vadd.f32 %v1794_v52, %v4466_v12 }
 0x7aa   : > { %v1795_v54 = vadd.f32 %v1793_v53, %v4458_v5 }
 0x7ab   : > { %v1802_v57 = vsel %vm962_vm0, %v1796_v56, 0.0 }
 0x7ac   : > { %v1799_v55 = vsel %vm962_vm0, %v1795_v54, 0.0 }
 0x7ad   : > { %1800 = vadd.xlane.f32.xlu1 %v1799_v55 }
 0x7b1   : > { %1803 = vadd.xlane.f32.xlu1 %v1802_v57 }
 0x83a   : > { %v1801_v61 = vpop.xlane.xlu1 %1800 }
 0x83b   : > { %v1806_v62 = vmul.f32 0.03125, %v1801_v61 }
 0x83d   : > { %v1808_v0 = vsub.f32 %v1795_v54, %v1806_v62  ;;  %v2536_v54 = vld [vmem:[#allocation28] ss:$0 sm:$0xff] }
 0x83e   : > { %v1804_v5 = vpop.xlane.xlu1 %1803 }
 0x83f   : > { %v1807_v63 = vmul.f32 0.03125, %v1804_v5  ;;  %v1810_v3 = vmul.f32 %v1808_v0, %v1808_v0 }
 0x841   : > { %v1809_v1 = vsub.f32 %v1796_v56, %v1807_v63  ;;  %v1812_v4 = vsel %vm962_vm0, %v1810_v3, 0.0 }
 0x843   : > { %v1811_v12 = vmul.f32 %v1809_v1, %v1809_v1 }
 0x845   : > { %v1815_v2 = vsel %vm962_vm0, %v1811_v12, 0.0 }
 0x846   : > { %1816 = vadd.xlane.f32.xlu1 %v1815_v2 }
 0x84a   : > { %1813 = vadd.xlane.f32.xlu1 %v1812_v4 }
 0x85b   : > { %1845 = vperm.xlu1 %3046, %v1842_v7  }
 0x8d3   : > { %v1817_v24 = vpop.xlane.xlu1 %1816 }
 0x8d4   : > { %v1819_v25 = vmul.f32 0.03125, %v1817_v24 }
 0x8d6   : > { %v1821_v26 = vadd.f32 1e-05, %v1819_v25 }
 0x8d7   : > { %v1814_v27 = vpop.xlane.xlu1 %1813 }
 0x8d8   : > { %3064 = vrsqrt.f32 %v1821_v26  ;;  %v1818_v28 = vmul.f32 0.03125, %v1814_v27 }
 0x8da   : > { %v1820_v29 = vadd.f32 1e-05, %v1818_v28 }
 0x8db   : > { %v4537_v37 = vpop.permute.xlu1 %1845 }
 0x8dc   : > { %3066 = vrsqrt.f32 %v1820_v29  ;;  %vm1850_vm6 = vcmp.eq.s32.totalorder %v4537_v37, 1 }
 0x8e2   : > { %v3065_v30 = vpop.eup %3064 }
 0x8e3   : > { %v1825_v32 = vmul.f32 %v3065_v30, %v1809_v1 }
 0x8e5   : > { %v1833_v34 = vmul.f32 %v2531_v31, %v1825_v32 }
 0x8e6   : > { %v3067_v33 = vpop.eup %3066 }
 0x8e7   : > { %v1824_v36 = vmul.f32 %v3067_v33, %v1808_v0  ;;  %v1841_v40 = vadd.f32 %v2532_v35, %v1833_v34 }
 0x8e9   : > { %v1832_v39 = vmul.f32 %v2531_v31, %v1824_v36  ;;  %v1853_v43 = vsel %vm1851_vm7, 0.0, %v1841_v40 }
 0x8eb   : > { %v1840_v41 = vadd.f32 %v2532_v35, %v1832_v39 }
 0x8ed   : > { %v1852_v42 = vsel %vm1850_vm6, 0.0, %v1840_v41 }
 0x8ee   : > { %2694 = vmatprep.mubr.msk.f32.mxu1 %vm962_vm0, %v1852_v42 }
 0x8ef   : > { %2695 = vmatmul.mubr.msk.f32.vlgmr.msra.gmra.mrb[8].mxu1 %vm962_vm0, %v1853_v43 }
 0x9c2   : > { %v2696_v48 = vpop.f32.mrb[8].mxu1 }
 0x9c3   : > { %v1943_v49 = vadd.f32 %v2696_v48, %v2533_v47  ;;  %v1937_v50 = vpop.f32.mrb[9].mxu1 }
 0x9c4   : > { %v1938_v51 = vadd.f32 %v2533_v47, %v1937_v50 }
 0x9c5   : > { %v1947_v53 = vmax.f32 %v1943_v49, 0.0 }
 0x9c6   : > { %v1946_v52 = vmax.f32 %v1938_v51, 0.0 }
 0x9c8   : > { %2713 = vmatprep.mubr.msk.f32.mxu0 %vm1963_vm8, %v1946_v52 }
 0x9c9   : > { %2714 = vmatmul.mubr.msk.f32.vlgmr.msra.gmra.mrb[8].mxu0 %vm1963_vm8, %v1947_v53 }
 0xa9c   : > { %v2715_v55 = vpop.f32.mrb[8].mxu0 }
 0xa9d   : > { %v2042_v56 = vadd.f32 %v2715_v55, %v2536_v54  ;;  %v2036_v57 = vpop.f32.mrb[9].mxu0 }
 0xa9e   : > { %v2037_v58 = vadd.f32 %v2536_v54, %v2036_v57 }
 0xa9f   : > { %v2046_v59 = vadd.f32 %v2042_v56, %v1853_v43 }
 0xaa0   : > { %v2045_v60 = vadd.f32 %v2037_v58, %v1852_v42 }
 0xaa1   : > { %v2052_v61 = vsel %vm962_vm0, %v2046_v59, 0.0 }
 0xaa2   : > { %2053 = vadd.xlane.f32.xlu1 %v2052_v61  ;;  %v2049_v62 = vsel %vm962_vm0, %v2045_v60, 0.0 }
 0xaa3   : > { %2050 = vadd.xlane.f32.xlu0 %v2049_v62 }
 0xb2f   : > { %v2054_v5 = vpop.xlane.xlu1 %2053 }
 0xb30   : > { %v2056_v63 = vmul.f32 0.03125, %v2054_v5  ;;  %v2051_v0 = vpop.xlane.xlu0 %2050 }
 0xb31   : > { %v2055_v1 = vmul.f32 0.03125, %v2051_v0 }
 0xb32   : > { %v2058_v12 = vsub.f32 %v2046_v59, %v2056_v63 }
 0xb33   : > { %v2057_v2 = vsub.f32 %v2045_v60, %v2055_v1 }
 0xb34   : > { %v2060_v6 = vmul.f32 %v2058_v12, %v2058_v12 }
 0xb35   : > { %v2059_v3 = vmul.f32 %v2057_v2, %v2057_v2 }
 0xb36   : > { %v2064_v7 = vsel %vm962_vm0, %v2060_v6, 0.0 }
 0xb37   : > { %v2061_v4 = vsel %vm962_vm0, %v2059_v3, 0.0 }
 0xb38   : > { %2062 = vadd.xlane.f32.xlu0 %v2061_v4 }
 0xb3c   : > { %2065 = vadd.xlane.f32.xlu0 %v2064_v7 }
 0xbc5   : > { %v2063_v8 = vpop.xlane.xlu0 %2062 }
 0xbc6   : > { %v2067_v9 = vmul.f32 0.03125, %v2063_v8 }
 0xbc8   : > { %v2069_v10 = vadd.f32 1e-05, %v2067_v9 }
 0xbc9   : > { %v2066_v11 = vpop.xlane.xlu0 %2065 }
 0xbca   : > { %3068 = vrsqrt.f32 %v2069_v10  ;;  %v2068_v13 = vmul.f32 0.03125, %v2066_v11 }
 0xbcc   : > { %v2070_v14 = vadd.f32 1e-05, %v2068_v13 }
 0xbce   : > { %3070 = vrsqrt.f32 %v2070_v14 }
 0xbd4   : > { %v3069_v15 = vpop.eup %3068 }
 0xbd5   : > { %v2073_v17 = vmul.f32 %v3069_v15, %v2057_v2 }
 0xbd7   : > { %v2081_v19 = vmul.f32 %v2539_v16, %v2073_v17 }
 0xbd8   : > { %v3071_v20 = vpop.eup %3070 }
 0xbd9   : > { %v2089_v21 = vadd.f32 %v2540_v18, %v2081_v19  ;;  %v2074_v22 = vmul.f32 %v3071_v20, %v2058_v12 }
 0xbdb   : > { %v2091_v23 = vsel %vm1850_vm6, 0.0, %v2089_v21  ;;  %v2082_v24 = vmul.f32 %v2539_v16, %v2074_v22 }
 0xbdc   : > { %2093 = vst.msk [vmem:[%s934_s15] sm:$0xff] %vm962_vm0, %v2091_v23 }
 0xbdd   : > { %v2090_v25 = vadd.f32 %v2540_v18, %v2082_v24 }
 0xbdf   : > { %v2092_v26 = vsel %vm1851_vm7, 0.0, %v2090_v25 }
 0xbe0   : > { %2094 = vst.msk [vmem:[%s934_s15 + $0x8] sm:$0xff] %vm962_vm0, %v2092_v26 }
 0xbe1   : > { %3623 = shalt.err (!%p3620_p12)
}
 0xbe2   : > { %s3624_s0 = scalar_lea.hbm %s4563_s11, 256  ;;  %s3628_s5 = scalar_lea.hbm %s4769_s17, 512 }
 0xbe3   : > { %p3625_p4 = scmp.ne.s32.totalorder %s4563_s11, %s3624_s0  ;;  %p3629_p2 = scmp.lt.u32.totalorder %s4563_s11, %s4769_s17 }
 0xbe4   : > { %p3630_p7 = scmp.lt.u32.totalorder %s3628_s5, %s3624_s0  ;;  %p3632_p0 = scmp.lt.u32.totalorder %s3624_s0, %s4563_s11 }
 0xbe5   : > { %p3626_p10 = pnand %p3625_p4, %p4770_p5 }
 0xbe6   : > { %p3631_p3 = por %p3630_p7, %p3629_p2 }
 0xbe7   : > { %p3627_p6 = pneg %p3626_p10 }
 0xbe8   : > { %p3633_p9 = por %p3632_p0, %p3631_p3 }
 0xbea   : > { %p3634_p8 = pnand %p3633_p9, %p3627_p6 }
 0xbec   : > { %3637 = shalt.err (!%p3634_p8)
}
 0xbed   : > { %s3743_s15 = smov 128   ;;  %s3744_s8 = smov 8  }
 0xbee   : > { %2864 = dma.vmem_to_hbm [thread:$0]  (%p4770_p5), %s4565_s13, 256, %s4563_s11, %s2096_s6, %s3743_s15, %s3743_s15, %s3744_s8  }
 0xbef   : > { %s2101_s10 = scalar_lea.sflag [#allocation34], %s4406_s4 }
 0xbf0   : > { %s4771_s30 = sld [smem:[#allocation71_spill]]  ;;  %s2146_s0 = sshll.u32 %s4509_s18, 4  ;;  %s2147_s0 = int_to_ptr.vmem [resolvable:$true] %s2146_s0 }
 0xbf1   : > { %s3745_s29 = smov 256   ;;  %s3746_s4 = smov 512  }
 0xbf2   : > { %2865 = sst [smem:[#allocation36]] (%p4770_p5), %s3745_s29  ;;  %s3747_s3 = smov 2  }
 0xbf3   : > { %2866 = sst [smem:[#allocation36 + $0x1]] (%p4770_p5), %s3746_s4  ;;  %s3748_s13 = smov 128  }
 0xbf4   : > { %2867 = sst [smem:[#allocation36 + $0x2]] (%p4770_p5), %s3747_s3  ;;  %s3749_s11 = smov 8  }
 0xbf5   : > { %2868 = sst [smem:[#allocation36 + $0x3]] (%p4770_p5), %s3748_s13  ;;  %s3751_s18 = smov 0  }
 0xbf6   : > { %s2129_s12 = scalar_lea.hbm %s4771_s30, %s2551_s7  ;;  %2869 = sst [smem:[#allocation36 + $0x4]] (%p4770_p5), %s3748_s13 }
 0xbf7   : > { %2870 = sst [smem:[#allocation36 + $0x5]] (%p4770_p5), %s3749_s11  ;;  %s3750_s7 = smov [#allocation35]  }
 0xbf8   : > { %2871 = dma.general (%p4770_p5), %s2147_s0, 512, %s2129_s12, %s2101_s10, %s3750_s7, [#allocation36], %s3751_s18, 0  }
 0xbf9 PF: > { %s2174_s6 = sand.u32 1, %s3704_s1   ;;  %p4772_p1 = scmp.ne.s32.totalorder %s4726_s14, 0 }
 0xbfa   : > { %p4773_p11 = scmp.ge.s32.totalorder %s3716_s24, 2  ;;  %s2175_s2 = scalar_lea.sflag [#allocation4], %s2174_s6 }
 0xbfc   : > { %p2934_p13 = pnand %p4773_p11, %p4772_p1 }
 0xbfe   : > { %3695 = dma.done.wait (!%p2934_p13), %s2175_s2, 256  }
 0xbff   : > { %3697 = vsyncadd (!%p2934_p13), %s2175_s2, 4294967040  ;;  %s2184_s5 = scalar_lea.sflag [#allocation34], %s2174_s6 }
 0xc00   : > { %3699 = dma.done.wait (!%p2934_p13), %s2184_s5, 512  }
 0xc01   : > { %3701 = vsyncadd (!%p2934_p13), %s2184_s5, 4294966784  ;;  %s4774_s28 = sld [smem:[#allocation50_spill]]  ;;  %p48_p5 = scmp.ge.s32.totalorder %s4087_s16, 4  }
 0xc02   : > { %s4775_s1 = smov %s3708_s22  ;;  %s4776_s22 = smov %s3712_s23 }
 0xc03   : > { %s4778_s24 = smov %s4087_s16  ;;  %50 = sbr.rel (!%p48_p5) target bundleno = 39 (0x27), region = 252 }
 0xc07   : > { %s4777_s23 = smov %s4774_s28 }
 0xc0a   :  { %2189 = vsyncpa [#allocation3], 1 }
 0xc0b   :  { %2191 = vsyncpa [#allocation3 + $0x1], 1 }
 0xc0c   :  { %2192 = vsyncpa [#allocation6], 1 }
 0xc0d   :  { %2194 = vsyncpa [#allocation6 + $0x1], 1 }
 0xc0e   :  { %2195 = vsyncpa [#allocation9], 1 }
 0xc0f   :  { %2196 = vsyncpa [#allocation12], 1 }
 0xc10   :  { %2197 = vsyncpa [#allocation15], 1 }
 0xc11   :  { %2198 = vsyncpa [#allocation18], 1 }
 0xc12   :  { %2199 = vsyncpa [#allocation21], 1 }
 0xc13   :  { %2200 = vsyncpa [#allocation24], 1 }
 0xc14   :  { %2201 = vsyncpa [#allocation27], 1 }
 0xc15   :  { %2202 = vsyncpa [#allocation30], 1 }
 0xc16   :  { %2203 = vsyncpa [#allocation4], 1 }
 0xc17   :  { %2205 = vsyncpa [#allocation4 + $0x1], 1 }
 0xc18   :  { %2206 = vsyncpa [#allocation34], 1 }
 0xc19   :  { %2208 = vsyncpa [#allocation34 + $0x1], 1 }

</bundles_post_ra>
